<compile_context>
chip_gen: v7x
topology: tpu7x:2x2x1
jax: 0.10.0
libtpu: 0.0.40
codegen_flags: <defaults>
</compile_context>

<pallas_src>
import numpy as np
import jax
import jax.numpy as jnp
from jax.experimental import pallas as pl
from jax.experimental.pallas import tpu as pltpu

# ---------------------------------------------------------------------------
# Problem constants (mirroring CausalInferenceModule.__init__)
# ---------------------------------------------------------------------------
FEATURE_RAW_DIMS = [58, 58, 58, 82, 82, 82, 82, 58, 58, 58, 74, 58, 58, 58, 58, 58, 58, 74]
NODE_CNT = len(FEATURE_RAW_DIMS)      # 18 agents
FEAT_PAD = 64                         # feature_padding_to == gcn_hid_dim == gcn_out_dim
ND = NODE_CNT * FEAT_PAD              # 1152 flattened GCN input width
INDEX = 0
X_DIM = FEATURE_RAW_DIMS[INDEX]       # 58, VAE reconstruction dim
ST_DIM = FEATURE_RAW_DIMS[INDEX]      # predictor state dim
Z_DIM = 8
ACT_DIM = 16                          # maxActionDim
ACT_ENC = 4                           # ActionEncodeLen
ACT_ENC_PAD = 8                       # padded action-code width inside kernel
N_MIX = 4                             # mixture components for pi head
HID = 64                              # VAE hidden dim

# packed-output lane layout: one lane-dense (TB, 256) slab
OUT_W = 256
# first 128-lane half (straight off the output-head matmul)
OFF_RECON = 0                         # 0  .. 58
OFF_PST = OFF_RECON + X_DIM           # 58 .. 116
OFF_PR = OFF_PST + ST_DIM             # 116
# second 128-lane half (straight off the encoder-head matmul)
OFF_MU = 128                          # 128 .. 136
OFF_LV = OFF_MU + Z_DIM               # 136 .. 144
OFF_PI = OFF_LV + Z_DIM               # 144 .. 148


def _round_up(v, m):
    return (v + m - 1) // m * m


# ---------------------------------------------------------------------------
# Fused Pallas kernel: neighbourhood-sliced GCN (kron-folded) + VAE
# ---------------------------------------------------------------------------
def _causal_kernel(x_ref, xnb_ref, act_ref,
                   k1_ref, b1_ref, k2_ref, b2_ref,
                   we1_ref, be1_ref, wa_ref, ba_ref,
                   wenc_ref, benc_ref,
                   wdz_ref, wda_ref, bmid_ref,
                   wout_ref, bout_ref,
                   out_ref):
    f32 = jnp.float32
    bf16 = jnp.bfloat16

    # ---- GCN layer 1, restricted to node INDEX's neighbourhood blocks
    #      h1[j] = relu((A@X)[j] @ W1 + b1) + X[j]   for j in NB(INDEX)
    p1 = jnp.dot(x_ref[...], k1_ref[...], preferred_element_type=f32)      # (TB, NBW)
    h1 = jnp.maximum(p1 + b1_ref[...], 0.0) + xnb_ref[...]                 # (TB, NBW)

    # ---- GCN layer 2, only node INDEX's output block
    #      nf = (A@H1)[INDEX] @ W2 + b2 + h1[INDEX]
    p2 = jnp.dot(h1.astype(bf16), k2_ref[...], preferred_element_type=f32)  # (TB, 64)
    nf = p2 + b2_ref[...] + h1[:, :FEAT_PAD]                                # (TB, 64)

    # ---- VAE encoder first layer + action encoder (separate small matmuls)
    h_enc = jnp.maximum(
        jnp.dot(nf.astype(bf16), we1_ref[...], preferred_element_type=f32)
        + be1_ref[...], 0.0)                                                # (TB, 64)
    ae = jnp.maximum(
        jnp.dot(act_ref[...], wa_ref[...], preferred_element_type=f32)
        + ba_ref[...], 0.0)                                                 # (TB, 8)

    # ---- encoder heads land at their FINAL lanes of the 2nd output half:
    #      mu -> [0:8], log_var -> [8:16], pi_logits -> [16:20], rest zero
    enc = (jnp.dot(h_enc.astype(bf16), wenc_ref[...], preferred_element_type=f32)
           + benc_ref[...])                                                 # (TB, 128)

    # masked in-lane softmax over the pi-logit lanes (no lane shuffles)
    lane = jax.lax.broadcasted_iota(jnp.int32, enc.shape, 1)
    pmask = (lane >= 2 * Z_DIM) & (lane < 2 * Z_DIM + N_MIX)
    m = jnp.max(jnp.where(pmask, enc, -jnp.inf), axis=-1, keepdims=True)
    e = jnp.where(pmask, jnp.exp(enc - m), 0.0)
    inv = pl.reciprocal(jnp.sum(e, axis=-1, keepdims=True), approx=True)
    second = jnp.where(pmask, e * inv, enc)                                 # (TB, 128)

    mu = enc[:, :Z_DIM]                         # deterministic latent z = mu

    # ---- decoder + predictor first layer (cols 0:64 decoder, 64:128 predictor)
    mid = jnp.maximum(
        jnp.dot(mu.astype(bf16), wdz_ref[...], preferred_element_type=f32)
        + jnp.dot(ae.astype(bf16), wda_ref[...], preferred_element_type=f32)
        + bmid_ref[...], 0.0)                                               # (TB, 128)

    # ---- output heads: recon -> lanes 0:58, pst -> 58:116, pr -> 116
    heads = (jnp.dot(mid.astype(bf16), wout_ref[...], preferred_element_type=f32)
             + bout_ref[...])                                               # (TB, 128)

    # ---- single unmasked, lane-dense (TB, 256) store
    out_ref[...] = jnp.concatenate([heads, second], axis=-1)


def _const_spec(shape):
    nd = len(shape)
    return pl.BlockSpec(shape, lambda i, nd=nd: (0,) * nd)


# ---------------------------------------------------------------------------
# One-time weight fusion (hoisted out of the per-call path)
# ---------------------------------------------------------------------------
def prepare_fused_params(params, a_hat_np, index=INDEX):
    f32, bf16 = jnp.float32, jnp.bfloat16
    a_np = np.asarray(a_hat_np, np.float32)

    # neighbourhood of node `index` (self-loop included), INDEX placed first so
    # its residual block sits at lane offset 0 inside the kernel.
    nbrs = np.nonzero(a_np[index])[0].tolist()
    nb = tuple([index] + [j for j in nbrs if j != index])
    nbw = len(nb) * FEAT_PAD
    nbw_pad = _round_up(nbw, 128)
    nb_arr = jnp.asarray(nb, jnp.int32)
    a = jnp.asarray(a_np, f32)

    # --- GCN folded into kron weights, sliced to INDEX's receptive field
    k1 = jnp.kron(a.T[:, nb_arr], params["gw1"])                       # (ND, nbw)
    k1 = jnp.pad(k1, ((0, 0), (0, nbw_pad - nbw))).astype(bf16)
    b1 = jnp.pad(jnp.tile(params["gb1"], (1, len(nb))),
                 ((0, 0), (0, nbw_pad - nbw))).astype(f32)
    k2 = jnp.kron(a[index, nb_arr][:, None], params["gw2"])            # (nbw, 64)
    k2 = jnp.pad(k2, ((0, nbw_pad - nbw), (0, 0))).astype(bf16)
    b2 = params["gb2"].astype(f32)                                     # (1, 64)

    # --- VAE encoder first layer (64->64) + action encoder (16->4, padded to 8)
    we1 = params["we1"].astype(bf16)
    be1 = params["be1"].astype(f32)
    wa = jnp.zeros((ACT_DIM, ACT_ENC_PAD), f32).at[:, :ACT_ENC].set(params["wa"]).astype(bf16)
    ba = jnp.zeros((1, ACT_ENC_PAD), f32).at[:, :ACT_ENC].set(params["ba"])

    # --- encoder heads padded to 128 output lanes at final offsets
    wenc = jnp.zeros((HID, 128), f32)
    wenc = wenc.at[:, 0:Z_DIM].set(params["wmu"])
    wenc = wenc.at[:, Z_DIM:2 * Z_DIM].set(params["wlv"])
    wenc = wenc.at[:, 2 * Z_DIM:2 * Z_DIM + N_MIX].set(params["wpi"])
    benc = jnp.zeros((1, 128), f32)
    benc = benc.at[:, 0:Z_DIM].set(params["bmu"])
    benc = benc.at[:, Z_DIM:2 * Z_DIM].set(params["blv"])
    benc = benc.at[:, 2 * Z_DIM:2 * Z_DIM + N_MIX].set(params["bpi"])

    # --- decoder / predictor first layer (cols 0:64 decoder, 64:128 predictor)
    wdz = jnp.concatenate([params["wd1z"], params["wp1z"]], axis=-1)    # (8, 128)
    wda4 = jnp.concatenate([params["wd1a"], params["wp1a"]], axis=-1)   # (4, 128)
    wda = jnp.zeros((ACT_ENC_PAD, 2 * HID), f32).at[:ACT_ENC, :].set(wda4)
    bmid = jnp.concatenate([params["bd1"], params["bp1"]], axis=-1)     # (1, 128)

    # --- output heads laid out at their final lane offsets
    wout = jnp.zeros((2 * HID, 2 * HID), f32)
    wout = wout.at[:HID, OFF_RECON:OFF_RECON + X_DIM].set(params["wd2"])
    wout = wout.at[HID:, OFF_PST:OFF_PST + ST_DIM].set(params["wps"])
    wout = wout.at[HID:, OFF_PR:OFF_PR + 1].set(params["wpr"])
    bout = jnp.zeros((1, 2 * HID), f32)
    bout = bout.at[:, OFF_RECON:OFF_RECON + X_DIM].set(params["bd2"])
    bout = bout.at[:, OFF_PST:OFF_PST + ST_DIM].set(params["bps"])
    bout = bout.at[:, OFF_PR:OFF_PR + 1].set(params["bpr"])

    return dict(nb=nb, nbw_pad=nbw_pad,
                k1=k1, b1=b1, k2=k2, b2=b2,
                we1=we1, be1=be1, wa=wa, ba=ba,
                wenc=wenc.astype(bf16), benc=benc,
                wdz=wdz.astype(bf16), wda=wda.astype(bf16), bmid=bmid,
                wout=wout.astype(bf16), bout=bout)


# ---------------------------------------------------------------------------
# pallas_call wrapper
# ---------------------------------------------------------------------------
def fused_causal_forward(fused, x_flat, pre_act):
    """x_flat: (B, NODE_CNT*FEAT_PAD) f32; pre_act: (B, ACT_DIM) f32."""
    f32, bf16 = jnp.float32, jnp.bfloat16
    B = x_flat.shape[0]

    TB = min(256, _round_up(max(B, 1), 8))          # fill the 256-wide MXU
    if 64 <= B <= 256:                              # v7x megacore: >=2 parallel blocks
        TB = _round_up((B + 1) // 2, 8)
    B_pad = _round_up(B, TB)
    nblk = B_pad // TB

    nb = fused["nb"]
    nbw = len(nb) * FEAT_PAD
    nbw_pad = fused["nbw_pad"]

    # per-call data prep (weights were fused once, offline)
    xp = jnp.pad(x_flat, ((0, B_pad - B), (0, 0))).astype(bf16)          # (B_pad, ND)
    x3 = x_flat.reshape(B, NODE_CNT, FEAT_PAD)
    x_nbr = jnp.concatenate([x3[:, j, :] for j in nb], axis=-1)          # (B, nbw)
    x_nbr = jnp.pad(x_nbr, ((0, B_pad - B), (0, nbw_pad - nbw))).astype(f32)
    ap = jnp.pad(pre_act, ((0, B_pad - B), (0, 0))).astype(bf16)         # (B_pad, 16)

    weight_names = ["k1", "b1", "k2", "b2", "we1", "be1", "wa", "ba",
                    "wenc", "benc", "wdz", "wda", "bmid", "wout", "bout"]
    weight_args = [fused[n] for n in weight_names]

    out = pl.pallas_call(
        _causal_kernel,
        out_shape=jax.ShapeDtypeStruct((B_pad, OUT_W), jnp.float32),
        grid_spec=pltpu.PrefetchScalarGridSpec(
            num_scalar_prefetch=0,
            grid=(nblk,),
            in_specs=[pl.BlockSpec((TB, ND), lambda i: (i, 0)),
                      pl.BlockSpec((TB, nbw_pad), lambda i: (i, 0)),
                      pl.BlockSpec((TB, ACT_DIM), lambda i: (i, 0))]
                     + [_const_spec(w.shape) for w in weight_args],
            out_specs=pl.BlockSpec((TB, OUT_W), lambda i: (i, 0)),
        ),
        compiler_params=pltpu.CompilerParams(
            dimension_semantics=("parallel",),
            vmem_limit_bytes=32 * 1024 * 1024,      # explicit for v5e safety
        ),
    )(xp, x_nbr, ap, *weight_args)

    out = out[:B]
    recon = out[:, OFF_RECON:OFF_RECON + X_DIM]
    pst = out[:, OFF_PST:OFF_PST + ST_DIM]
    pr = out[:, OFF_PR:OFF_PR + 1]
    mu = out[:, OFF_MU:OFF_MU + Z_DIM]
    log_var = out[:, OFF_LV:OFF_LV + Z_DIM]
    pi = out[:, OFF_PI:OFF_PI + N_MIX]
    return recon, pst, pr, mu, log_var, pi


# ---------------------------------------------------------------------------
# Parameter / graph construction (plain glue)
# ---------------------------------------------------------------------------
def make_params(key):
    ks = jax.random.split(key, 16)

    def lin(k, i, o, scale=0.1):
        return jax.random.normal(k, (i, o), jnp.float32) * scale

    return {
        # GCN
        "gw1": lin(ks[0], FEAT_PAD, FEAT_PAD),
        "gb1": jnp.zeros((1, FEAT_PAD), jnp.float32),
        "gw2": lin(ks[1], FEAT_PAD, FEAT_PAD),
        "gb2": jnp.zeros((1, FEAT_PAD), jnp.float32),
        # VAE encoder
        "we1": lin(ks[2], FEAT_PAD, HID), "be1": jnp.full((1, HID), 0.01, jnp.float32),
        "wmu": lin(ks[3], HID, Z_DIM),    "bmu": jnp.zeros((1, Z_DIM), jnp.float32),
        "wlv": lin(ks[4], HID, Z_DIM),    "blv": jnp.zeros((1, Z_DIM), jnp.float32),
        "wpi": lin(ks[5], HID, N_MIX),    "bpi": jnp.zeros((1, N_MIX), jnp.float32),
        # action encoder
        "wa": lin(ks[6], ACT_DIM, ACT_ENC), "ba": jnp.zeros((1, ACT_ENC), jnp.float32),
        # decoder
        "wd1z": lin(ks[7], Z_DIM, HID), "wd1a": lin(ks[8], ACT_ENC, HID),
        "bd1": jnp.zeros((1, HID), jnp.float32),
        "wd2": lin(ks[9], HID, X_DIM), "bd2": jnp.zeros((1, X_DIM), jnp.float32),
        # predictor
        "wp1z": lin(ks[10], Z_DIM, HID), "wp1a": lin(ks[11], ACT_ENC, HID),
        "bp1": jnp.zeros((1, HID), jnp.float32),
        "wps": lin(ks[12], HID, ST_DIM), "bps": jnp.zeros((1, ST_DIM), jnp.float32),
        "wpr": lin(ks[13], HID, 1),      "bpr": jnp.zeros((1, 1), jnp.float32),
    }


def build_norm_adjacency(edge_index, n):
    # dense A + I with symmetric normalization D^-1/2 (A+I) D^-1/2 (numpy: static)
    a = np.zeros((n, n), np.float32)
    a[edge_index[0], edge_index[1]] = 1.0
    a[edge_index[1], edge_index[0]] = 1.0
    a = a + np.eye(n, dtype=np.float32)
    d_inv_sqrt = 1.0 / np.sqrt(a.sum(-1))
    return a * d_inv_sqrt[:, None] * d_inv_sqrt[None, :]


# ---------------------------------------------------------------------------
# CausalInferenceModule.forward equivalent
# ---------------------------------------------------------------------------
def causal_inference_forward(fused, feature_list_byAgentIdx, preActs,
                             st_list_byAgentIdx, rs):
    batchsize = preActs.shape[0]
    x = jnp.concatenate(feature_list_byAgentIdx, axis=1)        # (B, N, FEAT_PAD)
    x_flat = x.reshape(batchsize, ND)
    pre_act = preActs[:, INDEX, :]                              # (B, ACT_DIM)

    recon, pst, pr, mu, log_var, pi = fused_causal_forward(fused, x_flat, pre_act)
    z = mu                                                      # deterministic latent

    st = jnp.squeeze(st_list_byAgentIdx[INDEX], axis=-2)        # (B, ST_DIM)
    if st.ndim == 1:
        st = st[None, :]
    z_st = jnp.concatenate((z, st), axis=-1)

    return (
        z_st,
        z_st,
        (recon, jnp.squeeze(feature_list_byAgentIdx[INDEX], axis=1), mu, log_var, pi),
        (pst, jnp.squeeze(st_list_byAgentIdx[INDEX], axis=1)),
        (pr, rs[:, INDEX, :]),
    )


# ---------------------------------------------------------------------------
# Pure-JAX f32 reference (same reconstructed semantics) for a loose check
# ---------------------------------------------------------------------------
def _reference_forward(params, a_hat_np, x_flat, pre_act):
    a = jnp.asarray(a_hat_np, jnp.float32)
    B = x_flat.shape[0]
    x = x_flat.reshape(B, NODE_CNT, FEAT_PAD)
    h1 = jnp.maximum(jnp.einsum("nm,bmd->bnd", a, x) @ params["gw1"]
                     + params["gb1"], 0.0) + x
    h2 = jnp.einsum("nm,bmd->bnd", a, h1) @ params["gw2"] + params["gb2"] + h1
    nf = h2[:, INDEX, :]
    h_enc = jnp.maximum(nf @ params["we1"] + params["be1"], 0.0)
    ae = jnp.maximum(pre_act @ params["wa"] + params["ba"], 0.0)
    mu = h_enc @ params["wmu"] + params["bmu"]
    lv = h_enc @ params["wlv"] + params["blv"]
    pi = jax.nn.softmax(h_enc @ params["wpi"] + params["bpi"], axis=-1)
    z = mu
    dh = jnp.maximum(z @ params["wd1z"] + ae @ params["wd1a"] + params["bd1"], 0.0)
    ph = jnp.maximum(z @ params["wp1z"] + ae @ params["wp1a"] + params["bp1"], 0.0)
    recon = dh @ params["wd2"] + params["bd2"]
    pst = ph @ params["wps"] + params["bps"]
    pr = ph @ params["wpr"] + params["bpr"]
    return recon, pst, pr, mu, lv, pi


# ---------------------------------------------------------------------------
if __name__ == "__main__":
    key = jax.random.PRNGKey(0)
    k_par, k_feat, k_act, k_st, k_rs = jax.random.split(key, 5)

    B = 2
    params = make_params(k_par)

    # ring graph over NODE_CNT agents (static numpy -> static neighbourhood)
    src = np.arange(NODE_CNT, dtype=np.int64)
    dst = (src + 1) % NODE_CNT
    edge_index = np.stack([src, dst], axis=0)
    a_hat = build_norm_adjacency(edge_index, NODE_CNT)

    fused = prepare_fused_params(params, a_hat)          # one-time weight fusion

    feat_keys = jax.random.split(k_feat, NODE_CNT)
    st_keys = jax.random.split(k_st, NODE_CNT)
    feature_list = [jax.random.normal(feat_keys[i], (B, 1, FEAT_PAD), jnp.float32)
                    for i in range(NODE_CNT)]
    st_list = [jax.random.normal(st_keys[i], (B, 1, ST_DIM), jnp.float32)
               for i in range(NODE_CNT)]
    preActs = jax.random.normal(k_act, (B, NODE_CNT, ACT_DIM), jnp.float32)
    rs = jax.random.normal(k_rs, (B, NODE_CNT, 1), jnp.float32)

    out = causal_inference_forward(fused, feature_list, preActs, st_list, rs)
    jax.block_until_ready(out)

    # shape checks mirroring the PyTorch return structure
    assert out[0].shape == (B, Z_DIM + ST_DIM)
    assert out[2][0].shape == (B, X_DIM) and out[2][2].shape == (B, Z_DIM)
    assert out[2][3].shape == (B, Z_DIM) and out[2][4].shape == (B, N_MIX)
    assert out[3][0].shape == (B, ST_DIM)
    assert out[4][0].shape == (B, 1) and out[4][1].shape == (B, 1)
    assert not bool(jnp.isnan(out[2][3]).any())   # log_var NaN check from forward()
    assert not bool(jnp.isnan(out[2][0]).any())

    # loose numerical check vs f32 reference (kernel uses bf16 MXU operands)
    x_flat = jnp.concatenate(feature_list, axis=1).reshape(B, ND)
    ref = _reference_forward(params, a_hat, x_flat, preActs[:, INDEX, :])
    got = (out[2][0], out[3][0], out[4][0], out[2][2], out[2][3], out[2][4])
    for g, r in zip(got, ref):
        assert float(jnp.max(jnp.abs(g - r))) < 0.15

    print("KERNEL_OK")
</pallas_src>

<mosaic_0001>
module attributes {stable_mosaic.version = 11 : i64} {
  func.func @_causal_kernel(%arg0: i32, %arg1: memref<8x1152xbf16, #tpu.memory_space<vmem>>, %arg2: memref<8x256xf32, #tpu.memory_space<vmem>>, %arg3: memref<8x16xbf16, #tpu.memory_space<vmem>>, %arg4: memref<1152x256xbf16, #tpu.memory_space<vmem>>, %arg5: memref<1x256xf32, #tpu.memory_space<vmem>>, %arg6: memref<256x64xbf16, #tpu.memory_space<vmem>>, %arg7: memref<1x64xf32, #tpu.memory_space<vmem>>, %arg8: memref<64x64xbf16, #tpu.memory_space<vmem>>, %arg9: memref<1x64xf32, #tpu.memory_space<vmem>>, %arg10: memref<16x8xbf16, #tpu.memory_space<vmem>>, %arg11: memref<1x8xf32, #tpu.memory_space<vmem>>, %arg12: memref<64x128xbf16, #tpu.memory_space<vmem>>, %arg13: memref<1x128xf32, #tpu.memory_space<vmem>>, %arg14: memref<8x128xbf16, #tpu.memory_space<vmem>>, %arg15: memref<8x128xbf16, #tpu.memory_space<vmem>>, %arg16: memref<1x128xf32, #tpu.memory_space<vmem>>, %arg17: memref<128x128xbf16, #tpu.memory_space<vmem>>, %arg18: memref<1x128xf32, #tpu.memory_space<vmem>>, %arg19: memref<8x256xf32, #tpu.memory_space<vmem>>) attributes {dimension_semantics = [#tpu.dimension_semantics<parallel>], iteration_bounds = array<i64: 1>, scalar_prefetch = 0 : i64, scratch_operands = 0 : i64, tpu.core_type = #tpu.core_type<tc>, window_params = [{transform_indices = @transform_0, window_bounds = array<i64: 8, 1152>}, {transform_indices = @transform_1, window_bounds = array<i64: 8, 256>}, {transform_indices = @transform_2, window_bounds = array<i64: 8, 16>}, {pipeline_mode = #tpu.pipeline_mode<synchronous>, transform_indices = @transform_3, window_bounds = array<i64: 1152, 256>}, {pipeline_mode = #tpu.pipeline_mode<synchronous>, transform_indices = @transform_4, window_bounds = array<i64: 1, 256>}, {pipeline_mode = #tpu.pipeline_mode<synchronous>, transform_indices = @transform_5, window_bounds = array<i64: 256, 64>}, {pipeline_mode = #tpu.pipeline_mode<synchronous>, transform_indices = @transform_6, window_bounds = array<i64: 1, 64>}, {pipeline_mode = #tpu.pipeline_mode<synchronous>, transform_indices = @transform_7, window_bounds = array<i64: 64, 64>}, {pipeline_mode = #tpu.pipeline_mode<synchronous>, transform_indices = @transform_8, window_bounds = array<i64: 1, 64>}, {pipeline_mode = #tpu.pipeline_mode<synchronous>, transform_indices = @transform_9, window_bounds = array<i64: 16, 8>}, {pipeline_mode = #tpu.pipeline_mode<synchronous>, transform_indices = @transform_10, window_bounds = array<i64: 1, 8>}, {pipeline_mode = #tpu.pipeline_mode<synchronous>, transform_indices = @transform_11, window_bounds = array<i64: 64, 128>}, {pipeline_mode = #tpu.pipeline_mode<synchronous>, transform_indices = @transform_12, window_bounds = array<i64: 1, 128>}, {pipeline_mode = #tpu.pipeline_mode<synchronous>, transform_indices = @transform_13, window_bounds = array<i64: 8, 128>}, {pipeline_mode = #tpu.pipeline_mode<synchronous>, transform_indices = @transform_14, window_bounds = array<i64: 8, 128>}, {pipeline_mode = #tpu.pipeline_mode<synchronous>, transform_indices = @transform_15, window_bounds = array<i64: 1, 128>}, {pipeline_mode = #tpu.pipeline_mode<synchronous>, transform_indices = @transform_16, window_bounds = array<i64: 128, 128>}, {pipeline_mode = #tpu.pipeline_mode<synchronous>, transform_indices = @transform_17, window_bounds = array<i64: 1, 128>}, {transform_indices = @transform_18, window_bounds = array<i64: 8, 256>}]} {
    %c0 = arith.constant 0 : index
    %c0_0 = arith.constant 0 : index
    %0 = vector.load %arg1[%c0, %c0_0] : memref<8x1152xbf16, #tpu.memory_space<vmem>>, vector<8x1152xbf16>
    %c0_1 = arith.constant 0 : index
    %c0_2 = arith.constant 0 : index
    %1 = vector.load %arg4[%c0_1, %c0_2] : memref<1152x256xbf16, #tpu.memory_space<vmem>>, vector<1152x256xbf16>
    %cst = arith.constant dense<0.000000e+00> : vector<8x256xf32>
    %2 = tpu.matmul %0, %1, %cst {dimension_numbers = #tpu.dot_dimension_numbers<[1], [0], [0], [1], [0, 0, 1, 1], [], []>} : vector<8x1152xbf16>, vector<1152x256xbf16>, vector<8x256xf32> -> vector<8x256xf32>
    %c0_3 = arith.constant 0 : index
    %c0_4 = arith.constant 0 : index
    %3 = vector.load %arg5[%c0_3, %c0_4] : memref<1x256xf32, #tpu.memory_space<vmem>>, vector<1x256xf32>
    %4 = vector.broadcast %3 : vector<1x256xf32> to vector<8x256xf32>
    %5 = arith.addf %2, %4 : vector<8x256xf32>
    %cst_5 = arith.constant 0.000000e+00 : f32
    %6 = vector.broadcast %cst_5 : f32 to vector<8x256xf32>
    %7 = arith.maximumf %5, %6 : vector<8x256xf32>
    %c0_6 = arith.constant 0 : index
    %c0_7 = arith.constant 0 : index
    %8 = vector.load %arg2[%c0_6, %c0_7] : memref<8x256xf32, #tpu.memory_space<vmem>>, vector<8x256xf32>
    %9 = arith.addf %7, %8 : vector<8x256xf32>
    %10 = arith.truncf %9 : vector<8x256xf32> to vector<8x256xbf16>
    %c0_8 = arith.constant 0 : index
    %c0_9 = arith.constant 0 : index
    %11 = vector.load %arg6[%c0_8, %c0_9] : memref<256x64xbf16, #tpu.memory_space<vmem>>, vector<256x64xbf16>
    %cst_10 = arith.constant dense<0.000000e+00> : vector<8x64xf32>
    %12 = tpu.matmul %10, %11, %cst_10 {dimension_numbers = #tpu.dot_dimension_numbers<[1], [0], [0], [1], [0, 0, 1, 1], [], []>} : vector<8x256xbf16>, vector<256x64xbf16>, vector<8x64xf32> -> vector<8x64xf32>
    %c0_11 = arith.constant 0 : index
    %c0_12 = arith.constant 0 : index
    %13 = vector.load %arg7[%c0_11, %c0_12] : memref<1x64xf32, #tpu.memory_space<vmem>>, vector<1x64xf32>
    %14 = vector.broadcast %13 : vector<1x64xf32> to vector<8x64xf32>
    %15 = arith.addf %12, %14 : vector<8x64xf32>
    %16 = vector.extract_strided_slice %9 {offsets = [0, 0], sizes = [8, 64], strides = [1, 1]} : vector<8x256xf32> to vector<8x64xf32>
    %17 = arith.addf %15, %16 : vector<8x64xf32>
    %18 = arith.truncf %17 : vector<8x64xf32> to vector<8x64xbf16>
    %c0_13 = arith.constant 0 : index
    %c0_14 = arith.constant 0 : index
    %19 = vector.load %arg8[%c0_13, %c0_14] : memref<64x64xbf16, #tpu.memory_space<vmem>>, vector<64x64xbf16>
    %cst_15 = arith.constant dense<0.000000e+00> : vector<8x64xf32>
    %20 = tpu.matmul %18, %19, %cst_15 {dimension_numbers = #tpu.dot_dimension_numbers<[1], [0], [0], [1], [0, 0, 1, 1], [], []>} : vector<8x64xbf16>, vector<64x64xbf16>, vector<8x64xf32> -> vector<8x64xf32>
    %c0_16 = arith.constant 0 : index
    %c0_17 = arith.constant 0 : index
    %21 = vector.load %arg9[%c0_16, %c0_17] : memref<1x64xf32, #tpu.memory_space<vmem>>, vector<1x64xf32>
    %22 = vector.broadcast %21 : vector<1x64xf32> to vector<8x64xf32>
    %23 = arith.addf %20, %22 : vector<8x64xf32>
    %cst_18 = arith.constant 0.000000e+00 : f32
    %24 = vector.broadcast %cst_18 : f32 to vector<8x64xf32>
    %25 = arith.maximumf %23, %24 : vector<8x64xf32>
    %c0_19 = arith.constant 0 : index
    %c0_20 = arith.constant 0 : index
    %26 = vector.load %arg3[%c0_19, %c0_20] : memref<8x16xbf16, #tpu.memory_space<vmem>>, vector<8x16xbf16>
    %c0_21 = arith.constant 0 : index
    %c0_22 = arith.constant 0 : index
    %27 = vector.load %arg10[%c0_21, %c0_22] : memref<16x8xbf16, #tpu.memory_space<vmem>>, vector<16x8xbf16>
    %cst_23 = arith.constant dense<0.000000e+00> : vector<8x8xf32>
    %28 = tpu.matmul %26, %27, %cst_23 {dimension_numbers = #tpu.dot_dimension_numbers<[1], [0], [0], [1], [0, 0, 1, 1], [], []>} : vector<8x16xbf16>, vector<16x8xbf16>, vector<8x8xf32> -> vector<8x8xf32>
    %c0_24 = arith.constant 0 : index
    %c0_25 = arith.constant 0 : index
    %29 = vector.load %arg11[%c0_24, %c0_25] : memref<1x8xf32, #tpu.memory_space<vmem>>, vector<1x8xf32>
    %30 = vector.broadcast %29 : vector<1x8xf32> to vector<8x8xf32>
    %31 = arith.addf %28, %30 : vector<8x8xf32>
    %cst_26 = arith.constant 0.000000e+00 : f32
    %32 = vector.broadcast %cst_26 : f32 to vector<8x8xf32>
    %33 = arith.maximumf %31, %32 : vector<8x8xf32>
    %34 = arith.truncf %25 : vector<8x64xf32> to vector<8x64xbf16>
    %c0_27 = arith.constant 0 : index
    %c0_28 = arith.constant 0 : index
    %35 = vector.load %arg12[%c0_27, %c0_28] : memref<64x128xbf16, #tpu.memory_space<vmem>>, vector<64x128xbf16>
    %cst_29 = arith.constant dense<0.000000e+00> : vector<8x128xf32>
    %36 = tpu.matmul %34, %35, %cst_29 {dimension_numbers = #tpu.dot_dimension_numbers<[1], [0], [0], [1], [0, 0, 1, 1], [], []>} : vector<8x64xbf16>, vector<64x128xbf16>, vector<8x128xf32> -> vector<8x128xf32>
    %c0_30 = arith.constant 0 : index
    %c0_31 = arith.constant 0 : index
    %37 = vector.load %arg13[%c0_30, %c0_31] : memref<1x128xf32, #tpu.memory_space<vmem>>, vector<1x128xf32>
    %38 = vector.broadcast %37 : vector<1x128xf32> to vector<8x128xf32>
    %39 = arith.addf %36, %38 : vector<8x128xf32>
    %40 = tpu.iota {dimensions = array<i32: 1>} : vector<8x128xi32>
    %c16_i32 = arith.constant 16 : i32
    %41 = vector.broadcast %c16_i32 : i32 to vector<8x128xi32>
    %42 = arith.cmpi sge, %40, %41 : vector<8x128xi32>
    %c20_i32 = arith.constant 20 : i32
    %43 = vector.broadcast %c20_i32 : i32 to vector<8x128xi32>
    %44 = arith.cmpi slt, %40, %43 : vector<8x128xi32>
    %45 = arith.andi %42, %44 : vector<8x128xi1>
    %cst_32 = arith.constant 0xFF800000 : f32
    %46 = vector.broadcast %cst_32 : f32 to vector<8x128xf32>
    %47 = arith.select %45, %39, %46 : vector<8x128xi1>, vector<8x128xf32>
    %cst_33 = arith.constant dense<0xFF800000> : vector<8xf32>
    %48 = vector.multi_reduction <maximumf>, %47, %cst_33 [1] : vector<8x128xf32> to vector<8xf32>
    %49 = vector.shape_cast %48 : vector<8xf32> to vector<8x1xf32>
    %50 = vector.broadcast %49 : vector<8x1xf32> to vector<8x128xf32>
    %51 = arith.subf %39, %50 : vector<8x128xf32>
    %52 = math.exp %51 : vector<8x128xf32>
    %cst_34 = arith.constant 0.000000e+00 : f32
    %53 = vector.broadcast %cst_34 : f32 to vector<8x128xf32>
    %54 = arith.select %45, %52, %53 : vector<8x128xi1>, vector<8x128xf32>
    %cst_35 = arith.constant dense<0.000000e+00> : vector<8xf32>
    %55 = vector.multi_reduction <add>, %54, %cst_35 [1] : vector<8x128xf32> to vector<8xf32>
    %56 = vector.shape_cast %55 : vector<8xf32> to vector<8x1xf32>
    %57 = tpu.reciprocal %56 {approx = true} : vector<8x1xf32> -> vector<8x1xf32>
    %58 = vector.broadcast %57 : vector<8x1xf32> to vector<8x128xf32>
    %59 = arith.mulf %54, %58 : vector<8x128xf32>
    %60 = arith.select %45, %59, %39 : vector<8x128xi1>, vector<8x128xf32>
    %61 = vector.extract_strided_slice %39 {offsets = [0, 0], sizes = [8, 8], strides = [1, 1]} : vector<8x128xf32> to vector<8x8xf32>
    %62 = arith.truncf %61 : vector<8x8xf32> to vector<8x8xbf16>
    %c0_36 = arith.constant 0 : index
    %c0_37 = arith.constant 0 : index
    %63 = vector.load %arg14[%c0_36, %c0_37] : memref<8x128xbf16, #tpu.memory_space<vmem>>, vector<8x128xbf16>
    %cst_38 = arith.constant dense<0.000000e+00> : vector<8x128xf32>
    %64 = tpu.matmul %62, %63, %cst_38 {dimension_numbers = #tpu.dot_dimension_numbers<[1], [0], [0], [1], [0, 0, 1, 1], [], []>} : vector<8x8xbf16>, vector<8x128xbf16>, vector<8x128xf32> -> vector<8x128xf32>
    %65 = arith.truncf %33 : vector<8x8xf32> to vector<8x8xbf16>
    %c0_39 = arith.constant 0 : index
    %c0_40 = arith.constant 0 : index
    %66 = vector.load %arg15[%c0_39, %c0_40] : memref<8x128xbf16, #tpu.memory_space<vmem>>, vector<8x128xbf16>
    %cst_41 = arith.constant dense<0.000000e+00> : vector<8x128xf32>
    %67 = tpu.matmul %65, %66, %cst_41 {dimension_numbers = #tpu.dot_dimension_numbers<[1], [0], [0], [1], [0, 0, 1, 1], [], []>} : vector<8x8xbf16>, vector<8x128xbf16>, vector<8x128xf32> -> vector<8x128xf32>
    %68 = arith.addf %64, %67 : vector<8x128xf32>
    %c0_42 = arith.constant 0 : index
    %c0_43 = arith.constant 0 : index
    %69 = vector.load %arg16[%c0_42, %c0_43] : memref<1x128xf32, #tpu.memory_space<vmem>>, vector<1x128xf32>
    %70 = vector.broadcast %69 : vector<1x128xf32> to vector<8x128xf32>
    %71 = arith.addf %68, %70 : vector<8x128xf32>
    %cst_44 = arith.constant 0.000000e+00 : f32
    %72 = vector.broadcast %cst_44 : f32 to vector<8x128xf32>
    %73 = arith.maximumf %71, %72 : vector<8x128xf32>
    %74 = arith.truncf %73 : vector<8x128xf32> to vector<8x128xbf16>
    %c0_45 = arith.constant 0 : index
    %c0_46 = arith.constant 0 : index
    %75 = vector.load %arg17[%c0_45, %c0_46] : memref<128x128xbf16, #tpu.memory_space<vmem>>, vector<128x128xbf16>
    %cst_47 = arith.constant dense<0.000000e+00> : vector<8x128xf32>
    %76 = tpu.matmul %74, %75, %cst_47 {dimension_numbers = #tpu.dot_dimension_numbers<[1], [0], [0], [1], [0, 0, 1, 1], [], []>} : vector<8x128xbf16>, vector<128x128xbf16>, vector<8x128xf32> -> vector<8x128xf32>
    %c0_48 = arith.constant 0 : index
    %c0_49 = arith.constant 0 : index
    %77 = vector.load %arg18[%c0_48, %c0_49] : memref<1x128xf32, #tpu.memory_space<vmem>>, vector<1x128xf32>
    %78 = vector.broadcast %77 : vector<1x128xf32> to vector<8x128xf32>
    %79 = arith.addf %76, %78 : vector<8x128xf32>
    %80 = tpu.concatenate %79, %60 in 1 : vector<8x128xf32>, vector<8x128xf32> -> vector<8x256xf32>
    %c0_50 = arith.constant 0 : index
    %c0_51 = arith.constant 0 : index
    %81 = vector.load %arg19[%c0_50, %c0_51] : memref<8x256xf32, #tpu.memory_space<vmem>>, vector<8x256xf32>
    tpu.vector_store %arg19[%c0_50, %c0_51], %80 {strides = array<i32>} : memref<8x256xf32, #tpu.memory_space<vmem>>, vector<8x256xf32>,
    return
  }
  func.func @transform_0(%arg0: i32) -> (i32, i32) {
    %c0_i32 = arith.constant 0 : i32
    %c0_i32_0 = arith.constant 0 : i32
    return %arg0, %c0_i32 : i32, i32
  }
  func.func @transform_1(%arg0: i32) -> (i32, i32) {
    %c0_i32 = arith.constant 0 : i32
    %c0_i32_0 = arith.constant 0 : i32
    return %arg0, %c0_i32 : i32, i32
  }
  func.func @transform_2(%arg0: i32) -> (i32, i32) {
    %c0_i32 = arith.constant 0 : i32
    %c0_i32_0 = arith.constant 0 : i32
    return %arg0, %c0_i32 : i32, i32
  }
  func.func @transform_3(%arg0: i32) -> (i32, i32) {
    %c0_i32 = arith.constant 0 : i32
    %c0_i32_0 = arith.constant 0 : i32
    %c0_i32_1 = arith.constant 0 : i32
    return %c0_i32, %c0_i32_0 : i32, i32
  }
  func.func @transform_4(%arg0: i32) -> (i32, i32) {
    %c0_i32 = arith.constant 0 : i32
    %c0_i32_0 = arith.constant 0 : i32
    %c0_i32_1 = arith.constant 0 : i32
    return %c0_i32, %c0_i32_0 : i32, i32
  }
  func.func @transform_5(%arg0: i32) -> (i32, i32) {
    %c0_i32 = arith.constant 0 : i32
    %c0_i32_0 = arith.constant 0 : i32
    %c0_i32_1 = arith.constant 0 : i32
    return %c0_i32, %c0_i32_0 : i32, i32
  }
  func.func @transform_6(%arg0: i32) -> (i32, i32) {
    %c0_i32 = arith.constant 0 : i32
    %c0_i32_0 = arith.constant 0 : i32
    %c0_i32_1 = arith.constant 0 : i32
    return %c0_i32, %c0_i32_0 : i32, i32
  }
  func.func @transform_7(%arg0: i32) -> (i32, i32) {
    %c0_i32 = arith.constant 0 : i32
    %c0_i32_0 = arith.constant 0 : i32
    %c0_i32_1 = arith.constant 0 : i32
    return %c0_i32, %c0_i32_0 : i32, i32
  }
  func.func @transform_8(%arg0: i32) -> (i32, i32) {
    %c0_i32 = arith.constant 0 : i32
    %c0_i32_0 = arith.constant 0 : i32
    %c0_i32_1 = arith.constant 0 : i32
    return %c0_i32, %c0_i32_0 : i32, i32
  }
  func.func @transform_9(%arg0: i32) -> (i32, i32) {
    %c0_i32 = arith.constant 0 : i32
    %c0_i32_0 = arith.constant 0 : i32
    %c0_i32_1 = arith.constant 0 : i32
    return %c0_i32, %c0_i32_0 : i32, i32
  }
  func.func @transform_10(%arg0: i32) -> (i32, i32) {
    %c0_i32 = arith.constant 0 : i32
    %c0_i32_0 = arith.constant 0 : i32
    %c0_i32_1 = arith.constant 0 : i32
    return %c0_i32, %c0_i32_0 : i32, i32
  }
  func.func @transform_11(%arg0: i32) -> (i32, i32) {
    %c0_i32 = arith.constant 0 : i32
    %c0_i32_0 = arith.constant 0 : i32
    %c0_i32_1 = arith.constant 0 : i32
    return %c0_i32, %c0_i32_0 : i32, i32
  }
  func.func @transform_12(%arg0: i32) -> (i32, i32) {
    %c0_i32 = arith.constant 0 : i32
    %c0_i32_0 = arith.constant 0 : i32
    %c0_i32_1 = arith.constant 0 : i32
    return %c0_i32, %c0_i32_0 : i32, i32
  }
  func.func @transform_13(%arg0: i32) -> (i32, i32) {
    %c0_i32 = arith.constant 0 : i32
    %c0_i32_0 = arith.constant 0 : i32
    %c0_i32_1 = arith.constant 0 : i32
    return %c0_i32, %c0_i32_0 : i32, i32
  }
  func.func @transform_14(%arg0: i32) -> (i32, i32) {
    %c0_i32 = arith.constant 0 : i32
    %c0_i32_0 = arith.constant 0 : i32
    %c0_i32_1 = arith.constant 0 : i32
    return %c0_i32, %c0_i32_0 : i32, i32
  }
  func.func @transform_15(%arg0: i32) -> (i32, i32) {
    %c0_i32 = arith.constant 0 : i32
    %c0_i32_0 = arith.constant 0 : i32
    %c0_i32_1 = arith.constant 0 : i32
    return %c0_i32, %c0_i32_0 : i32, i32
  }
  func.func @transform_16(%arg0: i32) -> (i32, i32) {
    %c0_i32 = arith.constant 0 : i32
    %c0_i32_0 = arith.constant 0 : i32
    %c0_i32_1 = arith.constant 0 : i32
    return %c0_i32, %c0_i32_0 : i32, i32
  }
  func.func @transform_17(%arg0: i32) -> (i32, i32) {
    %c0_i32 = arith.constant 0 : i32
    %c0_i32_0 = arith.constant 0 : i32
    %c0_i32_1 = arith.constant 0 : i32
    return %c0_i32, %c0_i32_0 : i32, i32
  }
  func.func @transform_18(%arg0: i32) -> (i32, i32) {
    %c0_i32 = arith.constant 0 : i32
    %c0_i32_0 = arith.constant 0 : i32
    return %arg0, %c0_i32 : i32, i32
  }
}

</mosaic_0001>

<bundles_post_ra>
// kernel: tpu_custom_call.1
= control target key start
LH: loop header
LB: loop body
LE: loop exit
PB: predicated region body
PF: predicated region fallthrough
CT: control target
= control target key end

     0   :  { %s2837_s0 = inlined_call_operand.vmem [shape: bf16[8,1152], index: 0, kind: input, shape index: {}]   ;;  %s2838_s1 = inlined_call_operand.vmem [shape: f32[8,256], index: 1, kind: input, shape index: {}]   ;;  %s2839_s2 = inlined_call_operand.vmem [shape: bf16[8,16], index: 2, kind: input, shape index: {}]   ;;  %s2840_s3 = inlined_call_operand.hbm [shape: bf16[1152,256], index: 3, kind: input, shape index: {}]   ;;  %s2841_s4 = inlined_call_operand.vmem [shape: f32[1,256], index: 4, kind: input, shape index: {}]   ;;  %s2842_s5 = inlined_call_operand.vmem [shape: bf16[256,64], index: 5, kind: input, shape index: {}]   ;;  %s2843_s6 = inlined_call_operand.vmem [shape: f32[1,64], index: 6, kind: input, shape index: {}]   ;;  %s2844_s7 = inlined_call_operand.vmem [shape: bf16[64,64], index: 7, kind: input, shape index: {}]   ;;  %s2845_s8 = inlined_call_operand.vmem [shape: f32[1,64], index: 8, kind: input, shape index: {}]   ;;  %s2846_s9 = inlined_call_operand.vmem [shape: bf16[16,8], index: 9, kind: input, shape index: {}]   ;;  %s2847_s10 = inlined_call_operand.vmem [shape: f32[1,8], index: 10, kind: input, shape index: {}]   ;;  %s2848_s11 = inlined_call_operand.vmem [shape: bf16[64,128], index: 11, kind: input, shape index: {}]   ;;  %s2849_s12 = inlined_call_operand.vmem [shape: f32[1,128], index: 12, kind: input, shape index: {}]   ;;  %s2850_s13 = inlined_call_operand.vmem [shape: bf16[8,128], index: 13, kind: input, shape index: {}]   ;;  %s2851_s14 = inlined_call_operand.vmem [shape: bf16[8,128], index: 14, kind: input, shape index: {}]   ;;  %s2852_s15 = inlined_call_operand.vmem [shape: f32[1,128], index: 15, kind: input, shape index: {}]   ;;  %s2853_s16 = inlined_call_operand.vmem [shape: bf16[128,128], index: 16, kind: input, shape index: {}]   ;;  %s2854_s17 = inlined_call_operand.vmem [shape: f32[1,128], index: 17, kind: input, shape index: {}]   ;;  %s2855_s18 = inlined_call_operand.hbm [shape: f32[8,256], index: 18, kind: output, shape index: {}]  }
   0x1   :  { %2858 = sst [smem:[#allocation8_spill]] %s2837_s0 }
   0x2   :  { %2859 = sst [smem:[#allocation9_spill]] %s2838_s1 }
   0x3   :  { %2860 = sst [smem:[#allocation10_spill]] %s2839_s2 }
   0x4   :  { %23 = vsyncpa [#allocation3], 0 }
   0x5   :  { %24 = vsyncpa [#allocation4], 0  ;;  %s2496_s27 = smov [#allocation2]   ;;  %s2448_s0 = scalar_lea.hbm %s2840_s3, 18432 }
   0x6   :  { %s36_s28 = sshll.u32 %s2496_s27, 4  ;;  %p2449_p0 = scmp.ne.s32.totalorder %s2840_s3, %s2448_s0  ;;  %s37_s28 = int_to_ptr.vmem [resolvable:$true] %s36_s28 }
   0x7   :  { %p2452_p1 = scmp.lt.u32.totalorder %s2448_s0, %s2840_s3 }
   0x9   :  { %p2454_p2 = pnand %p2452_p1, %p2449_p0 }
   0xb   :  { %2457 = shalt.err (!%p2454_p2)
}
   0xc   :  { %s2458_s22 = scalar_lea.vmem %s37_s28, 18432  ;;  %p2463_p4 = scmp.lt.s32.totalorder %s37_s28, %s37_s28 }
   0xd   :  { %p2459_p3 = scmp.ne.s32.totalorder %s37_s28, %s2458_s22  ;;  %p2464_p5 = scmp.lt.s32.totalorder %s2458_s22, %s2458_s22 }
   0xf   :  { %p2465_p6 = por %p2464_p5, %p2463_p4 }
  0x11   :  { %p2466_p7 = pnand %p2465_p6, %p2459_p3 }
  0x13   :  { %2469 = shalt.err (!%p2466_p7)
}
  0x14   :  { %s2497_s2 = smov 128   ;;  %s2498_s23 = smov 8  }
  0x15   :  { %42 = dma.hbm_to_vmem [thread:$0]  %s2840_s3, 18432, %s37_s28, [#allocation3], %s2497_s2, %s2497_s2, %s2498_s23  }
  0x16   :  { %2492 = dma.done.wait [#allocation3], 18432  }
  0x17   :  { %2493 = vsyncadd [#allocation3], 4294948864  ;;  %v2186_v0 = vld [vmem:[#allocation2 + $0x104] ss:$8 sps:$4 sm:$0xff]   ;;  %v2188_v1 = vld [vmem:[#allocation2 + $0x100] ss:$8 sps:$4 sm:$0xff]  }
  0x18   :  { %1029 = vmatprep.subr.bf16.mxu0 %v2186_v0  ;;  %v2189_v2 = vld [vmem:[#allocation2 + $0x114] ss:$8 sps:$4 sm:$0xff]   ;;  %v2191_v3 = vld [vmem:[#allocation2 + $0x110] ss:$8 sps:$4 sm:$0xff]   ;;  %v2192_v4 = vld [vmem:[#allocation2 + $0x124] ss:$8 sps:$4 sm:$0xff]  }
  0x19   :  { %1030 = vmatpush1.bf16.msra.mxu0 %v2188_v1  ;;  %v2194_v5 = vld [vmem:[#allocation2 + $0x120] ss:$8 sps:$4 sm:$0xff]   ;;  %v2195_v6 = vld [vmem:[#allocation2 + $0x134] ss:$8 sps:$4 sm:$0xff]   ;;  %v2197_v7 = vld [vmem:[#allocation2 + $0x130] ss:$8 sps:$4 sm:$0xff]  }
  0x1a   :  { %1031 = vmatprep.subr.bf16.mxu0 %v2189_v2  ;;  %v2198_v8 = vld [vmem:[#allocation2 + $0x144] ss:$8 sps:$4 sm:$0xff]   ;;  %v2200_v9 = vld [vmem:[#allocation2 + $0x140] ss:$8 sps:$4 sm:$0xff]   ;;  %v2201_v10 = vld [vmem:[#allocation2 + $0x154] ss:$8 sps:$4 sm:$0xff]  }
  0x1b   :  { %v2203_v11 = vld [vmem:[#allocation2 + $0x150] ss:$8 sps:$4 sm:$0xff]   ;;  %v2204_v12 = vld [vmem:[#allocation2 + $0x164] ss:$8 sps:$4 sm:$0xff]   ;;  %s2861_s27 = sld [smem:[#allocation8_spill]]  ;;  %vm2501_vm0 = vmmov 0  }
  0x1c   :  { %v2206_v15 = vld [vmem:[#allocation2 + $0x160] ss:$8 sps:$4 sm:$0xff]   ;;  %v2207_v16 = vld [vmem:[#allocation2 + $0x174] ss:$8 sps:$4 sm:$0xff]   ;;  %v2209_v17 = vld [vmem:[#allocation2 + $0x170] ss:$8 sps:$4 sm:$0xff]  }
  0x1d   :  { %1032 = vmatpush1.bf16.msra.mxu0 %v2191_v3  ;;  %v2210_v18 = vld [vmem:[#allocation2 + $0x184] ss:$8 sps:$4 sm:$0xff]   ;;  %v2212_v19 = vld [vmem:[#allocation2 + $0x180] ss:$8 sps:$4 sm:$0xff]   ;;  %v2213_v20 = vld [vmem:[#allocation2 + $0x194] ss:$8 sps:$4 sm:$0xff]  }
  0x1e   :  { %1033 = vmatprep.subr.bf16.mxu0 %v2192_v4  ;;  %v2260_v21 = vld [vmem:[#allocation2 + $0x4] ss:$8 sps:$4 sm:$0xff]   ;;  %v2262_v22 = vld [vmem:[#allocation2] ss:$8 sps:$4 sm:$0xff]   ;;  %v2215_v23 = vld [vmem:[#allocation2 + $0x190] ss:$8 sps:$4 sm:$0xff]  }
  0x1f   :  { %v2216_v24 = vld [vmem:[#allocation2 + $0x1a4] ss:$8 sps:$4 sm:$0xff]   ;;  %988 = vmatprep.subr.bf16.mxu1 %v2260_v21  ;;  %v2266_v25 = vld [vmem:[#allocation2 + $0x14] ss:$8 sps:$4 sm:$0xff]   ;;  %v2268_v26 = vld [vmem:[#allocation2 + $0x10] ss:$8 sps:$4 sm:$0xff]  }
  0x20   :  { %989 = vmatpush1.bf16.msra.mxu1 %v2262_v22  ;;  %v2218_v27 = vld [vmem:[#allocation2 + $0x1a0] ss:$8 sps:$4 sm:$0xff]   ;;  %v2272_v28 = vld [vmem:[#allocation2 + $0x24] ss:$8 sps:$4 sm:$0xff]   ;;  %v2219_v29 = vld [vmem:[#allocation2 + $0x1b4] ss:$8 sps:$4 sm:$0xff]  }
  0x21   :  { %1034 = vmatpush1.bf16.msra.mxu0 %v2194_v5  ;;  %v2613_v13 = vld [vmem:[%s2861_s27 + $0x8] sm:$0xff]  ;;  %990 = vmatprep.subr.bf16.mxu1 %v2266_v25  ;;  %v2278_v31 = vld [vmem:[#allocation2 + $0x34] ss:$8 sps:$4 sm:$0xff]   ;;  %v2221_v32 = vld [vmem:[#allocation2 + $0x1b0] ss:$8 sps:$4 sm:$0xff]   ;;  %s2863_s2 = sld [smem:[#allocation10_spill]] }
  0x22   :  { %1035 = vmatprep.subr.bf16.mxu0 %v2195_v6  ;;  %v1862_v14 = vcombine.high %v2613_v13, %v2613_v13  ;;  %v2274_v30 = vld [vmem:[#allocation2 + $0x20] ss:$8 sps:$4 sm:$0xff]   ;;  %v2222_v33 = vld [vmem:[#allocation2 + $0x1c4] ss:$8 sps:$4 sm:$0xff]   ;;  %v2280_v34 = vld [vmem:[#allocation2 + $0x30] ss:$8 sps:$4 sm:$0xff]   ;;  %v1861_v53 = vcombine.low %v2613_v13, %v2613_v13 }
  0x23   :  { %v2284_v35 = vld [vmem:[#allocation2 + $0x44] ss:$8 sps:$4 sm:$0xff]   ;;  %v2224_v36 = vld [vmem:[#allocation2 + $0x1c0] ss:$8 sps:$4 sm:$0xff]   ;;  %v2225_v37 = vld [vmem:[#allocation2 + $0x1d4] ss:$8 sps:$4 sm:$0xff]  }
  0x24   :  { %1061 = vmatprep.mubr.bf16.mxu0 %v1862_v14  ;;  %991 = vmatpush1.bf16.msra.mxu1 %v2268_v26  ;;  %v2286_v38 = vld [vmem:[#allocation2 + $0x40] ss:$8 sps:$4 sm:$0xff]   ;;  %v2290_v39 = vld [vmem:[#allocation2 + $0x54] ss:$8 sps:$4 sm:$0xff]   ;;  %v2227_v40 = vld [vmem:[#allocation2 + $0x1d0] ss:$8 sps:$4 sm:$0xff]  }
  0x25   :  { %1036 = vmatpush1.bf16.msra.mxu0 %v2197_v7  ;;  %992 = vmatprep.subr.bf16.mxu1 %v2272_v28  ;;  %v2228_v41 = vld [vmem:[#allocation2 + $0x1e4] ss:$8 sps:$4 sm:$0xff]   ;;  %v2292_v42 = vld [vmem:[#allocation2 + $0x50] ss:$8 sps:$4 sm:$0xff]   ;;  %v2230_v44 = vld [vmem:[#allocation2 + $0x1e0] ss:$8 sps:$4 sm:$0xff]  }
  0x26   :  { %1037 = vmatprep.subr.bf16.mxu0 %v2198_v8  ;;  %v2296_v43 = vld [vmem:[#allocation2 + $0x64] ss:$8 sps:$4 sm:$0xff]   ;;  %v2231_v45 = vld [vmem:[#allocation2 + $0x1f4] ss:$8 sps:$4 sm:$0xff]   ;;  %v2298_v46 = vld [vmem:[#allocation2 + $0x60] ss:$8 sps:$4 sm:$0xff]  }
  0x27   :  { %v2302_v47 = vld [vmem:[#allocation2 + $0x74] ss:$8 sps:$4 sm:$0xff]   ;;  %v2233_v48 = vld [vmem:[#allocation2 + $0x1f0] ss:$8 sps:$4 sm:$0xff]   ;;  %v2238_v49 = vld [vmem:[#allocation2 + $0x204] ss:$8 sps:$4 sm:$0xff]  }
  0x28   :  { %993 = vmatpush1.bf16.msra.mxu1 %v2274_v30  ;;  %v2304_v50 = vld [vmem:[#allocation2 + $0x70] ss:$8 sps:$4 sm:$0xff]   ;;  %v2308_v52 = vld [vmem:[#allocation2 + $0x84] ss:$8 sps:$4 sm:$0xff]   ;;  %v2236_v54 = vld [vmem:[#allocation2 + $0x200] ss:$8 sps:$4 sm:$0xff]  }
  0x29   :  { %1038 = vmatpush1.bf16.msra.mxu0 %v2200_v9  ;;  %994 = vmatprep.subr.bf16.mxu1 %v2278_v31  ;;  %v2620_v51 = vld [vmem:[%s2861_s27 + $0x10] sm:$0xff]  ;;  %v2310_v57 = vld [vmem:[#allocation2 + $0x80] ss:$8 sps:$4 sm:$0xff]   ;;  %v2244_v60 = vld [vmem:[#allocation2 + $0x224] ss:$8 sps:$4 sm:$0xff]   ;;  %vm1478_vm1 = vcmask 130048  }
  0x2a   :  { %1039 = vmatprep.subr.bf16.mxu0 %v2201_v10  ;;  %v1864_v55 = vcombine.high %v2620_v51, %v2620_v51  ;;  %v2241_v56 = vld [vmem:[#allocation2 + $0x214] ss:$8 sps:$4 sm:$0xff]   ;;  %v2239_v59 = vld [vmem:[#allocation2 + $0x210] ss:$8 sps:$4 sm:$0xff]   ;;  %v2322_v62 = vld [vmem:[#allocation2 + $0xa4] ss:$8 sps:$4 sm:$0xff]  }
  0x2b   :  { %v2316_v58 = vld [vmem:[#allocation2 + $0x94] ss:$8 sps:$4 sm:$0xff]   ;;  %v2318_v61 = vld [vmem:[#allocation2 + $0x90] ss:$8 sps:$4 sm:$0xff]   ;;  %v2242_v63 = vld [vmem:[#allocation2 + $0x220] ss:$8 sps:$4 sm:$0xff]  }
  0x2c   :  { %995 = vmatpush1.bf16.msra.mxu1 %v2280_v34  ;;  %v2247_v0 = vld [vmem:[#allocation2 + $0x234] ss:$8 sps:$4 sm:$0xff]   ;;  %v2324_v1 = vld [vmem:[#allocation2 + $0xa0] ss:$8 sps:$4 sm:$0xff]   ;;  %v2245_v3 = vld [vmem:[#allocation2 + $0x230] ss:$8 sps:$4 sm:$0xff]  }
  0x2d   :  { %1040 = vmatpush1.bf16.msra.mxu0 %v2203_v11  ;;  %996 = vmatprep.subr.bf16.mxu1 %v2284_v35  ;;  %v2328_v2 = vld [vmem:[#allocation2 + $0xb4] ss:$8 sps:$4 sm:$0xff]   ;;  %v75_v4 = vld [vmem:[%s2861_s27] sm:$0xff]  ;;  %v2330_v6 = vld [vmem:[#allocation2 + $0xb0] ss:$8 sps:$4 sm:$0xff]   ;;  %v2499_v35 = vmov 0  }
  0x2e   :  { %1041 = vmatprep.subr.bf16.mxu0 %v2204_v12  ;;  %v2250_v5 = vld [vmem:[#allocation2 + $0x244] ss:$8 sps:$4 sm:$0xff]   ;;  %v1860_v7 = vcombine.high %v75_v4, %v75_v4  ;;  %v2248_v9 = vld [vmem:[#allocation2 + $0x240] ss:$8 sps:$4 sm:$0xff]   ;;  %v2253_v10 = vld [vmem:[#allocation2 + $0x254] ss:$8 sps:$4 sm:$0xff]   ;;  %v1859_v26 = vcombine.low %v75_v4, %v75_v4 }
  0x2f   :  { %v2334_v8 = vld [vmem:[#allocation2 + $0xc4] ss:$8 sps:$4 sm:$0xff]   ;;  %v2336_v11 = vld [vmem:[#allocation2 + $0xc0] ss:$8 sps:$4 sm:$0xff]   ;;  %v2340_v12 = vld [vmem:[#allocation2 + $0xd4] ss:$8 sps:$4 sm:$0xff]  }
  0x30   :  { %997 = vmatpush1.bf16.msra.mxu1 %v2286_v38  ;;  %1020 = vmatprep.mubr.bf16.mxu1 %v1860_v7  ;;  %v2251_v13 = vld [vmem:[#allocation2 + $0x250] ss:$8 sps:$4 sm:$0xff]   ;;  %v2256_v14 = vld [vmem:[#allocation2 + $0x264] ss:$8 sps:$4 sm:$0xff]   ;;  %v2263_v25 = vld [vmem:[#allocation2 + $0x280] ss:$8 sps:$4 sm:$0xff]  }
  0x31   :  { %1042 = vmatpush1.bf16.msra.mxu0 %v2206_v15  ;;  %998 = vmatprep.subr.bf16.mxu1 %v2290_v39  ;;  %v2342_v15 = vld [vmem:[#allocation2 + $0xd0] ss:$8 sps:$4 sm:$0xff]   ;;  %v2265_v22 = vld [vmem:[#allocation2 + $0x284] ss:$8 sps:$4 sm:$0xff]   ;;  %v2360_v28 = vld [vmem:[#allocation2 + $0x400] ss:$8 sps:$4 sm:$0xff]  }
  0x32   :  { %1043 = vmatprep.subr.bf16.mxu0 %v2207_v16  ;;  %v2346_v16 = vld [vmem:[#allocation2 + $0xe4] ss:$8 sps:$4 sm:$0xff]   ;;  %v2257_v21 = vld [vmem:[#allocation2 + $0x270] ss:$8 sps:$4 sm:$0xff]   ;;  %v2368_v30 = vld [vmem:[#allocation2 + $0x414] ss:$8 sps:$4 sm:$0xff]  }
  0x33   :  { %v2277_v31 = vld [vmem:[#allocation2 + $0x2a4] ss:$8 sps:$4 sm:$0xff]   ;;  %v2275_v34 = vld [vmem:[#allocation2 + $0x2a0] ss:$8 sps:$4 sm:$0xff]   ;;  %v2380_v38 = vld [vmem:[#allocation2 + $0x434] ss:$8 sps:$4 sm:$0xff]  }
  0x34   :  { %999 = vmatpush1.bf16.msra.mxu1 %v2292_v42  ;;  %v2281_v39 = vld [vmem:[#allocation2 + $0x2b0] ss:$8 sps:$4 sm:$0xff]   ;;  %v2386_v42 = vld [vmem:[#allocation2 + $0x444] ss:$8 sps:$4 sm:$0xff]   ;;  %v2345_v7 = vld [vmem:[#allocation2 + $0x354] ss:$8 sps:$4 sm:$0xff]  }
  0x35   :  { %1044 = vmatpush1.bf16.msra.mxu0 %v2209_v17  ;;  %1000 = vmatprep.subr.bf16.mxu1 %v2296_v43  ;;  %v2254_v17 = vld [vmem:[#allocation2 + $0x260] ss:$8 sps:$4 sm:$0xff]   ;;  %v2331_v4 = vld [vmem:[#allocation2 + $0x330] ss:$8 sps:$4 sm:$0xff]   ;;  %vm1417_vm2 = vcmask 523264   ;;  %vm1631_vm3 = vcmask 1043456  }
  0x36   :  { %1045 = vmatprep.subr.bf16.mxu0 %v2210_v18  ;;  %v2259_v18 = vld [vmem:[#allocation2 + $0x274] ss:$8 sps:$4 sm:$0xff]   ;;  %v2287_v43 = vld [vmem:[#allocation2 + $0x2c0] ss:$8 sps:$4 sm:$0xff]   ;;  %vm1627_vm4 = vcmask 64512  }
  0x38   :  { %1001 = vmatpush1.bf16.msra.mxu1 %v2298_v46  ;;  %v2392_v46 = vld [vmem:[#allocation2 + $0x454] ss:$8 sps:$4 sm:$0xff]  }
  0x39   :  { %1046 = vmatpush1.bf16.msra.mxu0 %v2212_v19  ;;  %1002 = vmatprep.subr.bf16.mxu1 %v2302_v47  ;;  %v2348_v19 = vld [vmem:[#allocation2 + $0xe0] ss:$8 sps:$4 sm:$0xff]   ;;  %v2293_v47 = vld [vmem:[#allocation2 + $0x2d0] ss:$8 sps:$4 sm:$0xff]  }
  0x3a   :  { %1047 = vmatprep.subr.bf16.mxu0 %v2213_v20  ;;  %v2352_v20 = vld [vmem:[#allocation2 + $0xf4] ss:$8 sps:$4 sm:$0xff]  }
  0x3c   :  { %1003 = vmatpush1.bf16.msra.mxu1 %v2304_v50  ;;  %v2398_v50 = vld [vmem:[#allocation2 + $0x464] ss:$8 sps:$4 sm:$0xff]  }
  0x3d   :  { %1048 = vmatpush1.bf16.msra.mxu0 %v2215_v23  ;;  %1004 = vmatprep.subr.bf16.mxu1 %v2308_v52  ;;  %v2354_v23 = vld [vmem:[#allocation2 + $0xf0] ss:$8 sps:$4 sm:$0xff]   ;;  %v2299_v52 = vld [vmem:[#allocation2 + $0x2e0] ss:$8 sps:$4 sm:$0xff]  }
  0x3e   :  { %1049 = vmatprep.subr.bf16.mxu0 %v2216_v24  ;;  %v2362_v24 = vld [vmem:[#allocation2 + $0x404] ss:$8 sps:$4 sm:$0xff]  }
  0x40   :  { %1005 = vmatpush1.bf16.msra.mxu1 %v2310_v57  ;;  %v2315_v57 = vld [vmem:[#allocation2 + $0x304] ss:$8 sps:$4 sm:$0xff]  }
  0x41   :  { %1050 = vmatpush1.bf16.msra.mxu0 %v2218_v27  ;;  %1006 = vmatprep.subr.bf16.mxu1 %v2316_v58  ;;  %v2271_v27 = vld [vmem:[#allocation2 + $0x294] ss:$8 sps:$4 sm:$0xff]   ;;  %v2402_v58 = vld [vmem:[#allocation2 + $0x470] ss:$8 sps:$4 sm:$0xff]  }
  0x42   :  { %1051 = vmatprep.subr.bf16.mxu0 %v2219_v29  ;;  %v2269_v29 = vld [vmem:[#allocation2 + $0x290] ss:$8 sps:$4 sm:$0xff]  }
  0x44   :  { %1007 = vmatpush1.bf16.msra.mxu1 %v2318_v61  ;;  %v2313_v61 = vld [vmem:[#allocation2 + $0x300] ss:$8 sps:$4 sm:$0xff]  }
  0x45   :  { %1052 = vmatpush1.bf16.msra.mxu0 %v2221_v32  ;;  %1008 = vmatprep.subr.bf16.mxu1 %v2322_v62  ;;  %v2366_v32 = vld [vmem:[#allocation2 + $0x410] ss:$8 sps:$4 sm:$0xff]  }
  0x46   :  { %1053 = vmatprep.subr.bf16.mxu0 %v2222_v33  ;;  %v2374_v33 = vld [vmem:[#allocation2 + $0x424] ss:$8 sps:$4 sm:$0xff]  }
  0x48   :  { %1009 = vmatpush1.bf16.msra.mxu1 %v2324_v1  ;;  %v2319_v1 = vld [vmem:[#allocation2 + $0x310] ss:$8 sps:$4 sm:$0xff]  }
  0x49   :  { %1054 = vmatpush1.bf16.msra.mxu0 %v2224_v36  ;;  %1010 = vmatprep.subr.bf16.mxu1 %v2328_v2  ;;  %v2283_v36 = vld [vmem:[#allocation2 + $0x2b4] ss:$8 sps:$4 sm:$0xff]   ;;  %v2327_v2 = vld [vmem:[#allocation2 + $0x324] ss:$8 sps:$4 sm:$0xff]  }
  0x4a   :  { %1055 = vmatprep.subr.bf16.mxu0 %v2225_v37  ;;  %v2372_v37 = vld [vmem:[#allocation2 + $0x420] ss:$8 sps:$4 sm:$0xff]  }
  0x4c   :  { %1011 = vmatpush1.bf16.msra.mxu1 %v2330_v6  ;;  %v2337_v6 = vld [vmem:[#allocation2 + $0x340] ss:$8 sps:$4 sm:$0xff]  }
  0x4d   :  { %1056 = vmatpush1.bf16.msra.mxu0 %v2227_v40  ;;  %1012 = vmatprep.subr.bf16.mxu1 %v2334_v8  ;;  %v2289_v40 = vld [vmem:[#allocation2 + $0x2c4] ss:$8 sps:$4 sm:$0xff]   ;;  %v2343_v8 = vld [vmem:[#allocation2 + $0x350] ss:$8 sps:$4 sm:$0xff]  }
  0x4e   :  { %1057 = vmatprep.subr.bf16.mxu0 %v2228_v41  ;;  %v2378_v41 = vld [vmem:[#allocation2 + $0x430] ss:$8 sps:$4 sm:$0xff]  }
  0x50   :  { %1013 = vmatpush1.bf16.msra.mxu1 %v2336_v11  ;;  %v2357_v11 = vld [vmem:[#allocation2 + $0x374] ss:$8 sps:$4 sm:$0xff]  }
  0x51   :  { %1058 = vmatpush1.bf16.msra.mxu0 %v2230_v44  ;;  %1014 = vmatprep.subr.bf16.mxu1 %v2340_v12  ;;  %v2295_v44 = vld [vmem:[#allocation2 + $0x2d4] ss:$8 sps:$4 sm:$0xff]   ;;  %v2355_v12 = vld [vmem:[#allocation2 + $0x370] ss:$8 sps:$4 sm:$0xff]  }
  0x52   :  { %1059 = vmatprep.subr.bf16.mxu0 %v2231_v45  ;;  %v2384_v45 = vld [vmem:[#allocation2 + $0x440] ss:$8 sps:$4 sm:$0xff]  }
  0x54   :  { %1015 = vmatpush1.bf16.msra.mxu1 %v2342_v15  ;;  %v2371_v15 = vld [vmem:[#allocation2 + $0x394] ss:$8 sps:$4 sm:$0xff]  }
  0x55   :  { %1060 = vmatpush1.bf16.msra.mxu0 %v2233_v48  ;;  %1016 = vmatprep.subr.bf16.mxu1 %v2346_v16  ;;  %v2301_v48 = vld [vmem:[#allocation2 + $0x2e4] ss:$8 sps:$4 sm:$0xff]   ;;  %v2369_v16 = vld [vmem:[#allocation2 + $0x390] ss:$8 sps:$4 sm:$0xff]  }
  0x56   :  { %1070 = vmatprep.subr.bf16.mxu0 %v2238_v49  ;;  %v2390_v49 = vld [vmem:[#allocation2 + $0x450] ss:$8 sps:$4 sm:$0xff]  }
  0x58   :  { %1062 = vmatmul.mubr.bf16.vlgmr.msra.gmra.mrb[0].mxu0 %v1861_v53  ;;  %1017 = vmatpush1.bf16.msra.mxu1 %v2348_v19  ;;  %v2307_v53 = vld [vmem:[#allocation2 + $0x2f4] ss:$8 sps:$4 sm:$0xff]  }
  0x59   :  { %1071 = vmatpush1.bf16.msra.mxu0 %v2236_v54  ;;  %1102 = vmatprep.mubr.bf16.mxu0 %v1864_v55  ;;  %v2396_v54 = vld [vmem:[#allocation2 + $0x460] ss:$8 sps:$4 sm:$0xff]   ;;  %v2404_v55 = vld [vmem:[#allocation2 + $0x474] ss:$8 sps:$4 sm:$0xff]  }
  0x5a   :  { %1072 = vmatprep.subr.bf16.mxu0 %v2241_v56  ;;  %1018 = vmatprep.subr.bf16.mxu1 %v2352_v20  ;;  %v2305_v56 = vld [vmem:[#allocation2 + $0x2f0] ss:$8 sps:$4 sm:$0xff]   ;;  %v2383_v19 = vld [vmem:[#allocation2 + $0x3b4] ss:$8 sps:$4 sm:$0xff]  }
  0x5b   :  { %v2381_v20 = vld [vmem:[#allocation2 + $0x3b0] ss:$8 sps:$4 sm:$0xff]  }
  0x5c   :  { %1019 = vmatpush1.bf16.msra.mxu1 %v2354_v23  ;;  %v2395_v23 = vld [vmem:[#allocation2 + $0x3d4] ss:$8 sps:$4 sm:$0xff]  }
  0x5d   :  { %1073 = vmatpush1.bf16.msra.mxu0 %v2239_v59  ;;  %1152 = vmatprep.subr.bf16.mxu1 %v2362_v24  ;;  %v2632_v59 = vld [vmem:[%s2861_s27 + $0x18] sm:$0xff] }
  0x5e   :  { %1074 = vmatprep.subr.bf16.mxu0 %v2244_v60  ;;  %v1863_v60 = vcombine.low %v2620_v51, %v2620_v51  ;;  %v1866_v62 = vcombine.high %v2632_v59, %v2632_v59  ;;  %v2325_v51 = vld [vmem:[#allocation2 + $0x320] ss:$8 sps:$4 sm:$0xff]   ;;  %v2393_v24 = vld [vmem:[#allocation2 + $0x3d0] ss:$8 sps:$4 sm:$0xff]  }
  0x5f   :  { %1021 = vmatmul.mubr.bf16.vlgmr.msra.gmra.mrb[0].mxu1 %v1859_v26  ;;  %v2399_v26 = vld [vmem:[#allocation2 + $0x3e0] ss:$8 sps:$4 sm:$0xff]  }
  0x60   :  { %1153 = vmatpush1.bf16.msra.mxu1 %v2360_v28  ;;  %1184 = vmatprep.mubr.bf16.mxu1 %v2499_v35  ;;  %v2411_v28 = vld [vmem:[%s2842_s5 + $0x40] sm:$0xff]   ;;  %v2416_v35 = vld [vmem:[%s2842_s5 + $0x10] sm:$0xff]  }
  0x61   :  { %1075 = vmatpush1.bf16.msra.mxu0 %v2242_v63  ;;  %1154 = vmatprep.subr.bf16.mxu1 %v2368_v30  ;;  %v2321_v63 = vld [vmem:[#allocation2 + $0x314] ss:$8 sps:$4 sm:$0xff]   ;;  %v2413_v30 = vld [vmem:[%s2842_s5 + $0x48] sm:$0xff]  }
  0x62   :  { %1076 = vmatprep.subr.bf16.mxu0 %v2247_v0  ;;  %v2410_v0 = vld [vmem:[%s2861_s27 + $0x20] ss:$0 sps:$4 sm:$0xff]   ;;  %s2862_s27 = sld [smem:[#allocation9_spill]] }
  0x64   :  { %1155 = vmatpush1.bf16.msra.mxu1 %v2366_v32  ;;  %v2414_v32 = vld [vmem:[%s2842_s5 + $0x8] sm:$0xff]  }
  0x65   :  { %1077 = vmatpush1.bf16.msra.mxu0 %v2245_v3  ;;  %1156 = vmatprep.subr.bf16.mxu1 %v2374_v33  ;;  %v2333_v3 = vld [vmem:[#allocation2 + $0x334] ss:$8 sps:$4 sm:$0xff]  }
  0x66   :  { %1078 = vmatprep.subr.bf16.mxu0 %v2250_v5  ;;  %v2339_v5 = vld [vmem:[#allocation2 + $0x344] ss:$8 sps:$4 sm:$0xff]   ;;  %v2415_v33 = vld [vmem:[%s2842_s5 + $0x50] sm:$0xff]  }
  0x68   :  { %1157 = vmatpush1.bf16.msra.mxu1 %v2372_v37  ;;  %v2418_v37 = vld [vmem:[%s2842_s5 + $0x18] sm:$0xff]  }
  0x69   :  { %1079 = vmatpush1.bf16.msra.mxu0 %v2248_v9  ;;  %1158 = vmatprep.subr.bf16.mxu1 %v2380_v38  ;;  %v2351_v9 = vld [vmem:[#allocation2 + $0x364] ss:$8 sps:$4 sm:$0xff]  }
  0x6a   :  { %1080 = vmatprep.subr.bf16.mxu0 %v2253_v10  ;;  %v2349_v10 = vld [vmem:[#allocation2 + $0x360] ss:$8 sps:$4 sm:$0xff]  }
  0x6b   :  { %v2419_v38 = vld [vmem:[%s2842_s5 + $0x60] sm:$0xff]  }
  0x6c   :  { %1159 = vmatpush1.bf16.msra.mxu1 %v2378_v41  ;;  %v2422_v41 = vld [vmem:[%s2842_s5 + $0x28] sm:$0xff]  }
  0x6d   :  { %1081 = vmatpush1.bf16.msra.mxu0 %v2251_v13  ;;  %1160 = vmatprep.subr.bf16.mxu1 %v2386_v42  ;;  %v2365_v13 = vld [vmem:[#allocation2 + $0x384] ss:$8 sps:$4 sm:$0xff]   ;;  %v2423_v42 = vld [vmem:[%s2842_s5 + $0x70] sm:$0xff]  }
  0x6e   :  { %1082 = vmatprep.subr.bf16.mxu0 %v2256_v14  ;;  %v2363_v14 = vld [vmem:[#allocation2 + $0x380] ss:$8 sps:$4 sm:$0xff]  }
  0x70   :  { %1161 = vmatpush1.bf16.msra.mxu1 %v2384_v45  ;;  %v2426_v45 = vld [vmem:[%s2842_s5 + $0x38] sm:$0xff]  }
  0x71   :  { %1083 = vmatpush1.bf16.msra.mxu0 %v2254_v17  ;;  %1162 = vmatprep.subr.bf16.mxu1 %v2392_v46  ;;  %v2377_v17 = vld [vmem:[#allocation2 + $0x3a4] ss:$8 sps:$4 sm:$0xff]  }
  0x72   :  { %1084 = vmatprep.subr.bf16.mxu0 %v2259_v18  ;;  %v2375_v18 = vld [vmem:[#allocation2 + $0x3a0] ss:$8 sps:$4 sm:$0xff]  }
  0x73   :  { %v2427_v46 = vld [vmem:[%s2844_s7] sm:$0xff]  }
  0x74   :  { %1163 = vmatpush1.bf16.msra.mxu1 %v2390_v49 }
  0x75   :  { %1085 = vmatpush1.bf16.msra.mxu0 %v2257_v21  ;;  %1164 = vmatprep.subr.bf16.mxu1 %v2398_v50  ;;  %v2389_v21 = vld [vmem:[#allocation2 + $0x3c4] ss:$8 sps:$4 sm:$0xff]  }
  0x76   :  { %1086 = vmatprep.subr.bf16.mxu0 %v2265_v22  ;;  %v2387_v22 = vld [vmem:[#allocation2 + $0x3c0] ss:$8 sps:$4 sm:$0xff]  }
  0x78   :  { %1165 = vmatpush1.bf16.msra.mxu1 %v2396_v54 }
  0x79   :  { %1087 = vmatpush1.bf16.msra.mxu0 %v2263_v25  ;;  %1166 = vmatprep.subr.bf16.mxu1 %v2404_v55  ;;  %v2401_v25 = vld [vmem:[#allocation2 + $0x3e4] ss:$8 sps:$4 sm:$0xff]  }
  0x7a   :  { %1088 = vmatprep.subr.bf16.mxu0 %v2271_v27  ;;  %v2407_v27 = vld [vmem:[#allocation2 + $0x3f4] ss:$8 sps:$4 sm:$0xff]  }
  0x7c   :  { %1167 = vmatpush1.bf16.msra.mxu1 %v2402_v58  ;;  %v226_v58 = vlaneseq }
  0x7d   :  { %1089 = vmatpush1.bf16.msra.mxu0 %v2269_v29  ;;  %v2412_v29 = vld [vmem:[%s2842_s5] sm:$0xff]   ;;  %2056 = vmatprep.subr.bf16.mxu1 %v2411_v28 }
  0x7e   :  { %1090 = vmatprep.subr.bf16.mxu0 %v2277_v31  ;;  %v2405_v31 = vld [vmem:[#allocation2 + $0x3f0] ss:$8 sps:$4 sm:$0xff]  }
  0x7f   :  { %1185 = vmatmul.mubr.bf16.vlgmr.msra.gmra.mrb[4].mxu1 %v2410_v0 }
  0x80   :  { %2057 = vmatpush3.bf16.msra.mxu1 %v2412_v29 }
  0x81   :  { %1091 = vmatpush1.bf16.msra.mxu0 %v2275_v34  ;;  %2058 = vmatprep.subr.bf16.mxu1 %v2413_v30  ;;  %v1865_v34 = vcombine.low %v2632_v59, %v2632_v59  ;;  %v227_v59 = vshrl.u32 %v226_v58, 7 }
  0x82   :  { %1092 = vmatprep.subr.bf16.mxu0 %v2283_v36  ;;  %v2417_v36 = vld [vmem:[%s2842_s5 + $0x58] sm:$0xff]  }
  0x84   :  { %2059 = vmatpush3.bf16.msra.mxu1 %v2414_v32 }
  0x85   :  { %1093 = vmatpush1.bf16.msra.mxu0 %v2281_v39  ;;  %2060 = vmatprep.subr.bf16.mxu1 %v2415_v33  ;;  %v2420_v39 = vld [vmem:[%s2842_s5 + $0x20] sm:$0xff]   ;;  %v2434_v33 = vld [vmem:[%s2848_s11 + $0x10] sm:$0xff]  }
  0x86   :  { %1094 = vmatprep.subr.bf16.mxu0 %v2289_v40  ;;  %v2421_v40 = vld [vmem:[%s2842_s5 + $0x68] sm:$0xff]  }
  0x88   :  { %2061 = vmatpush3.bf16.msra.mxu1 %v2416_v35 }
  0x89   :  { %1095 = vmatpush1.bf16.msra.mxu0 %v2287_v43  ;;  %2062 = vmatprep.subr.bf16.mxu1 %v2417_v36  ;;  %v2424_v43 = vld [vmem:[%s2842_s5 + $0x30] sm:$0xff]  }
  0x8a   :  { %1096 = vmatprep.subr.bf16.mxu0 %v2295_v44  ;;  %v2425_v44 = vld [vmem:[%s2842_s5 + $0x78] sm:$0xff]  }
  0x8c   :  { %2063 = vmatpush3.bf16.msra.mxu1 %v2418_v37 }
  0x8d   :  { %1097 = vmatpush1.bf16.msra.mxu0 %v2293_v47  ;;  %2064 = vmatprep.subr.bf16.mxu1 %v2419_v38  ;;  %v2500_v47 = vmov 0.0  }
  0x8e   :  { %1098 = vmatprep.subr.bf16.mxu0 %v2301_v48  ;;  %v2428_v48 = vld [vmem:[%s2844_s7 + $0x8] sm:$0xff]  }
  0x90   :  { %2065 = vmatpush3.bf16.msra.mxu1 %v2420_v39  ;;  %v2029_v39 = vld [vmem:[%s2845_s8] ss:$0 sm:$0xff] }
  0x91   :  { %1099 = vmatpush1.bf16.msra.mxu0 %v2299_v52  ;;  %2066 = vmatprep.subr.bf16.mxu1 %v2421_v40 }
  0x92   :  { %1100 = vmatprep.subr.bf16.mxu0 %v2307_v53 }
  0x94   :  { %2067 = vmatpush3.bf16.msra.mxu1 %v2422_v41  ;;  %v2035_v41 = vld [vmem:[%s2847_s10] ss:$0 sm:$0xff] }
  0x95   :  { %1101 = vmatpush1.bf16.msra.mxu0 %v2305_v56  ;;  %2068 = vmatprep.subr.bf16.mxu1 %v2423_v42 }
  0x96   :  { %1111 = vmatprep.subr.bf16.mxu0 %v2315_v57 }
  0x98   :  { %1103 = vmatmul.mubr.bf16.vlgmr.msra.gmra.mrb[0].mxu0 %v1863_v60  ;;  %2069 = vmatpush3.bf16.msra.mxu1 %v2424_v43  ;;  %v228_v60 = vsub.s32 0, %v227_v59 }
  0x99   :  { %1112 = vmatpush1.bf16.msra.mxu0 %v2313_v61  ;;  %1143 = vmatprep.mubr.bf16.mxu0 %v1866_v62  ;;  %v224_v61 = vld [vmem:[%s2841_s4] sm:$0x3]  ;;  %v232_v62 = vsub.s32 1, %v227_v59 }
  0x9a   :  { %1113 = vmatprep.subr.bf16.mxu0 %v2321_v63  ;;  %2070 = vmatprep.subr.bf16.mxu1 %v2425_v44  ;;  %v229_v63 = vrot.slane %v224_v61, %v228_v60  ;;  %v2038_v59 = vld [vmem:[%s2849_s12] ss:$0 sm:$0xff] }
  0x9b   :  { %v233_v0 = vrot.slane %v224_v61, %v232_v62 }
  0x9c   :  { %2071 = vmatpush3.bf16.msra.mxu1 %v2426_v45  ;;  %v1626_v45 = vld [vmem:[%s2851_s14] sm:$0xf] }
  0x9d   :  { %1114 = vmatpush1.bf16.msra.mxu0 %v2319_v1  ;;  %2115 = vmatprep.subr.bf16.mxu1 %v2500_v47 }
  0x9e   :  { %1115 = vmatprep.subr.bf16.mxu0 %v2327_v2 }
  0xa1   :  { %1116 = vmatpush1.bf16.msra.mxu0 %v2325_v51 }
  0xa2   :  { %1117 = vmatprep.subr.bf16.mxu0 %v2333_v3 }
  0xa5   :  { %1118 = vmatpush1.bf16.msra.mxu0 %v2331_v4 }
  0xa6   :  { %1119 = vmatprep.subr.bf16.mxu0 %v2339_v5 }
  0xa9   :  { %1120 = vmatpush1.bf16.msra.mxu0 %v2337_v6 }
  0xaa   :  { %1121 = vmatprep.subr.bf16.mxu0 %v2345_v7 }
  0xad   :  { %1122 = vmatpush1.bf16.msra.mxu0 %v2343_v8 }
  0xae   :  { %1123 = vmatprep.subr.bf16.mxu0 %v2351_v9  ;;  %v1195_v9 = vld [vmem:[%s2862_s27] sm:$0xff] }
  0xb1   :  { %1124 = vmatpush1.bf16.msra.mxu0 %v2349_v10 }
  0xb2   :  { %1125 = vmatprep.subr.bf16.mxu0 %v2357_v11 }
  0xb5   :  { %1126 = vmatpush1.bf16.msra.mxu0 %v2355_v12  ;;  %v1196_v12 = vld [vmem:[%s2862_s27 + $0x8] sm:$0xff] }
  0xb6   :  { %1127 = vmatprep.subr.bf16.mxu0 %v2365_v13 }
  0xb9   :  { %1128 = vmatpush1.bf16.msra.mxu0 %v2363_v14 }
  0xba   :  { %1129 = vmatprep.subr.bf16.mxu0 %v2371_v15 }
  0xbd   :  { %1130 = vmatpush1.bf16.msra.mxu0 %v2369_v16 }
  0xbe   :  { %1131 = vmatprep.subr.bf16.mxu0 %v2377_v17 }
  0xc1   :  { %1132 = vmatpush1.bf16.msra.mxu0 %v2375_v18  ;;  %v2429_v18 = vld [vmem:[%s2844_s7 + $0x10] sm:$0xff]  }
  0xc2   :  { %1133 = vmatprep.subr.bf16.mxu0 %v2383_v19  ;;  %v2430_v19 = vld [vmem:[%s2844_s7 + $0x18] sm:$0xff]  }
  0xc5   :  { %1134 = vmatpush1.bf16.msra.mxu0 %v2381_v20  ;;  %v2431_v20 = vld [vmem:[%s2846_s9] sm:$0xff]  }
  0xc6   :  { %1135 = vmatprep.subr.bf16.mxu0 %v2389_v21  ;;  %v1462_v21 = vld [vmem:[%s2863_s2] sm:$0xf] }
  0xc9   :  { %1136 = vmatpush1.bf16.msra.mxu0 %v2387_v22  ;;  %v2432_v22 = vld [vmem:[%s2848_s11] sm:$0xff]  }
  0xca   :  { %1137 = vmatprep.subr.bf16.mxu0 %v2395_v23  ;;  %v2433_v23 = vld [vmem:[%s2848_s11 + $0x8] sm:$0xff]  }
  0xcd   :  { %1138 = vmatpush1.bf16.msra.mxu0 %v2393_v24 }
  0xce   :  { %1139 = vmatprep.subr.bf16.mxu0 %v2401_v25  ;;  %v2012_v25 = vld [vmem:[%s2843_s6] ss:$0 sm:$0xff] }
  0xd1   :  { %1140 = vmatpush1.bf16.msra.mxu0 %v2399_v26 }
  0xd2   :  { %1141 = vmatprep.subr.bf16.mxu0 %v2407_v27 }
  0xd5   :  { %1142 = vmatpush1.bf16.msra.mxu0 %v2405_v31 }
  0xd6   :  { %2103 = vmatprep.subr.bf16.mxu0 %v2500_v47 }
  0xd8   :  { %1144 = vmatmul.mubr.bf16.vlgmr.msra.gmra.mrb[0].mxu0 %v1865_v34  ;;  %v2435_v34 = vld [vmem:[%s2848_s11 + $0x18] sm:$0xff]  }
  0xd9   :  { %2104 = vmatpush3.bf16.msra.mxu0 %v2427_v46  ;;  %2111 = vmatprep.mubr.msk.bf16.mxu0 %vm2501_vm0, %v2500_v47 }
  0xda   :  { %2105 = vmatprep.subr.bf16.mxu0 %v2500_v47 }
  0xdd   :  { %2106 = vmatpush3.bf16.msra.mxu0 %v2428_v48 }
  0xde   :  { %2107 = vmatprep.subr.bf16.mxu0 %v2500_v47 }
  0xe1   :  { %2108 = vmatpush3.bf16.msra.mxu0 %v2429_v18 }
  0xe2   :  { %2109 = vmatprep.subr.bf16.mxu0 %v2500_v47 }
  0xe5   :  { %2110 = vmatpush3.bf16.msra.mxu0 %v2430_v19 }
 0x132   :  { %v1022_v49 = vpop.f32.mrb[0].mxu1 }
 0x133   :  { %v1024_v50 = vpop.f32.mrb[1].mxu1  ;;  %v1023_v1 = vadd.f32 %v1022_v49, %v229_v63 }
 0x134   :  { %v1026_v52 = vpop.f32.mrb[2].mxu1  ;;  %v1025_v2 = vadd.f32 %v1024_v50, %v233_v0 }
 0x135   :  { %v1027_v53 = vpop.f32.mrb[3].mxu1  ;;  %v1633_v52 = vsel %vm1631_vm3, %v1626_v45, 0 }
 0x152   :  { %v1186_v54 = vpop.f32.mrb[4].mxu1 }
 0x153   :  { %v1188_v55 = vpop.f32.mrb[5].mxu1 }
 0x154   :  { %v1190_v56 = vpop.f32.mrb[6].mxu1 }
 0x155   :  { %v1191_v57 = vpop.f32.mrb[7].mxu1 }
 0x156   :  { %v1607_v57 = vand.u32 127, %v226_v58  ;;  %v2436_v58 = vld [vmem:[%s2853_s16] sm:$0xff]  }
 0x158   :  { %vm1608_vm5 = vcmp.ge.s32.totalorder %v1607_v57, 16  ;;  %vm1609_vm6 = vcmp.lt.s32.totalorder %v1607_v57, 20 }
 0x159   :  { %vm2775_vm7 = vmand %vm1608_vm5, %vm1609_vm6 }
 0x1ab   :  { %v1145_v51 = vpop.f32.mrb[0].mxu0 }
 0x1ac   :  { %v2166_v3 = vadd.f32 %v1145_v51, %v1023_v1  ;;  %v1147_v4 = vpop.f32.mrb[1].mxu0 }
 0x1ad   :  { %v2169_v5 = vadd.f32 %v1147_v4, %v1025_v2  ;;  %v1149_v6 = vpop.f32.mrb[2].mxu0 }
 0x1ae   :  { %v2167_v7 = vadd.f32 %v2166_v3, %v1186_v54  ;;  %v1150_v8 = vpop.f32.mrb[3].mxu0  ;;  %v1624_v54 = vld [vmem:[%s2850_s13] sm:$0xf] }
 0x1af   :  { %v2170_v10 = vadd.f32 %v2169_v5, %v1188_v55  ;;  %v1679_v56 = vsel %vm1631_vm3, %v1624_v54, 0  ;;  %v2437_v5 = vld [vmem:[%s2853_s16 + $0x8] sm:$0xff]   ;;  %v2438_v8 = vld [vmem:[%s2853_s16 + $0x10] sm:$0xff]  }
 0x1b0   :  { %v1193_v11 = vmax.f32 %v2167_v7, 0.0 }
 0x1b1   :  { %v1194_v13 = vmax.f32 %v2170_v10, 0.0  ;;  %v2440_v10 = vld [vmem:[%s2853_s16 + $0x20] sm:$0xff]  }
 0x1b2   :  { %v1197_v14 = vadd.f32 %v1195_v9, %v1193_v11  ;;  %v2439_v9 = vld [vmem:[%s2853_s16 + $0x18] sm:$0xff]   ;;  %v2441_v11 = vld [vmem:[%s2853_s16 + $0x28] sm:$0xff]  }
 0x1b3   :  { %v1198_v15 = vadd.f32 %v1196_v12, %v1194_v13  ;;  %v2442_v12 = vld [vmem:[%s2853_s16 + $0x30] sm:$0xff]   ;;  %v2443_v13 = vld [vmem:[%s2853_s16 + $0x38] sm:$0xff]  }
 0x1b4   :  { %v1199_v17 = vpack.c.bf16 %v1197_v14, %v1197_v14 }
 0x1b5   :  { %v1200_v16 = vpack.c.bf16 %v1198_v15, %v1198_v15 }
 0x1b7   :  { %1368 = vmatprep.mubr.bf16.mxu1 %v1200_v16 }
 0x1b8   :  { %1369 = vmatmul.mubr.bf16.vlgmr.msra.gmra.mrb[8].mxu1 %v1199_v17 }
 0x1b9   :  { %2117 = vmatprep.mubr.msk.bf16.mxu1 %vm2501_vm0, %v2500_v47  ;;  %2116 = vmatpush3.bf16.msra.mxu1 %v2431_v20  ;;  %v2046_v20 = vld [vmem:[%s2852_s15] ss:$0 sm:$0xff]  ;;  %s2502_s15 = smov [#allocation5]  }
 0x1ba   :  { %2121 = vmatprep.subr.bf16.mxu1 %v2500_v47  ;;  %s1850_s29 = sshll.u32 %s2502_s15, 4  ;;  %s1851_s29 = int_to_ptr.vmem [resolvable:$true] %s1850_s29 }
 0x1bb   :  { %s2470_s30 = scalar_lea.vmem %s1851_s29, 256  ;;  %p2475_p9 = scmp.lt.s32.totalorder %s1851_s29, %s1851_s29 }
 0x1bc   :  { %p2471_p8 = scmp.ne.s32.totalorder %s1851_s29, %s2470_s30  ;;  %p2476_p10 = scmp.lt.s32.totalorder %s2470_s30, %s2470_s30 }
 0x1be   :  { %p2477_p11 = por %p2476_p10, %p2475_p9 }
 0x1c0   :  { %2118 = vmatmul.mubr.msk.bf16.vlgmr.msra.gmra.mrb[12].mxu1 %vm1478_vm1, %v1462_v21  ;;  %p2478_p12 = pnand %p2477_p11, %p2471_p8 }
 0x1c1   :  { %2122 = vmatpush3.bf16.msra.mxu1 %v2432_v22  ;;  %2129 = vmatprep.mubr.msk.bf16.mxu1 %vm2501_vm0, %v2500_v47 }
 0x1c2   :  { %2123 = vmatprep.subr.bf16.mxu1 %v2500_v47 }
 0x1c5   :  { %2124 = vmatpush3.bf16.msra.mxu1 %v2433_v23 }
 0x1c6   :  { %2125 = vmatprep.subr.bf16.mxu1 %v2500_v47 }
 0x1c9   :  { %2126 = vmatpush3.bf16.msra.mxu1 %v2434_v33 }
 0x1ca   :  { %2127 = vmatprep.subr.bf16.mxu1 %v2500_v47 }
 0x1cd   :  { %2128 = vmatpush3.bf16.msra.mxu1 %v2435_v34 }
 0x1ce   :  { %2133 = vmatprep.subr.bf16.mxu1 %v2500_v47 }
 0x28b   :  { %v2072_v24 = vpop.f32.mrb[8].mxu1 }
 0x28c   :  { %v2073_v26 = vpop.f32.mrb[9].mxu1 }
 0x28d   :  { %v2074_v27 = vadd.f32 %v2073_v26, %v2072_v24  ;;  %v2075_v28 = vpop.f32.mrb[10].mxu1 }
 0x28e   :  { %v2076_v29 = vpop.f32.mrb[11].mxu1 }
 0x28f   :  { %v1371_v30 = vadd.f32 %v2074_v27, %v2012_v25 }
 0x291   :  { %v1376_v31 = vadd.f32 %v1371_v30, %v1197_v14 }
 0x293   :  { %v1377_v32 = vpack.c.bf16 %v1376_v31, %v1376_v31  ;;  %v1516_v35 = vpop.f32.mrb[12].mxu1  ;;  %v2047_v31 = vld [vmem:[%s2854_s17] ss:$0 sm:$0xff] }
 0x294   :  { %v2119_v36 = vpop.f32.mrb[13].mxu1  ;;  %v1517_v49 = vadd.f32 %v2035_v41, %v1516_v35 }
 0x295   :  { %2112 = vmatmul.mubr.msk.bf16.vlgmr.msra.gmra.mrb[4].mxu0 %vm1417_vm2, %v1377_v32  ;;  %v1519_v37 = vpop.f32.mrb[14].mxu1 }
 0x296   :  { %v2120_v38 = vpop.f32.mrb[15].mxu1  ;;  %v1522_v53 = vmax.f32 %v1517_v49, 0.0 }
 0x298   :  { %v1625_v55 = vpack.c.bf16 %v1522_v53, %v1522_v53 }
 0x368   :  { %v1455_v40 = vpop.f32.mrb[4].mxu0 }
 0x369   :  { %v1456_v42 = vadd.f32 %v2029_v39, %v1455_v40  ;;  %v2113_v43 = vpop.f32.mrb[5].mxu0 }
 0x36a   :  { %v1458_v44 = vpop.f32.mrb[6].mxu0 }
 0x36b   :  { %v1461_v46 = vmax.f32 %v1456_v42, 0.0  ;;  %v2114_v48 = vpop.f32.mrb[7].mxu0 }
 0x36d   :  { %v1523_v50 = vpack.c.bf16 %v1461_v46, %v1461_v46 }
 0x36f   :  { %2130 = vmatmul.mubr.msk.bf16.vlgmr.msra.gmra.mrb[16].mxu1 %vm1417_vm2, %v1523_v50 }
 0x370   :  { %2134 = vmatpush3.bf16.msra.mxu1 %v1633_v52  ;;  %2135 = vmatprep.mubr.msk.bf16.mxu1 %vm2501_vm0, %v2500_v47 }
 0x371   :  { %2139 = vmatprep.subr.bf16.mxu1 %v2500_v47 }
 0x377   :  { %2136 = vmatmul.mubr.msk.bf16.vlgmr.msra.gmra.mrb[20].mxu1 %vm1627_vm4, %v1625_v55 }
 0x378   :  { %2140 = vmatpush3.bf16.msra.mxu1 %v1679_v56  ;;  %2141 = vmatprep.mubr.msk.bf16.mxu1 %vm2501_vm0, %v2500_v47 }
 0x379   :  { %2145 = vmatprep.subr.bf16.mxu1 %v2500_v47 }
 0x442   :  { %v1600_v60 = vpop.f32.mrb[16].mxu1 }
 0x443   :  { %v1601_v62 = vadd.f32 %v2038_v59, %v1600_v60  ;;  %v2131_v63 = vpop.f32.mrb[17].mxu1 }
 0x444   :  { %v1603_v0 = vpop.f32.mrb[18].mxu1 }
 0x445   :  { %v1623_v1 = vpack.c.bf16 %v1601_v62, %v1601_v62  ;;  %v2132_v2 = vpop.f32.mrb[19].mxu1  ;;  %v1611_v51 = vsel %vm2775_vm7, %v1601_v62, -inf }
 0x446   :  { %1612 = vmax.xlane.f32.xlu0 %v1611_v51 }
 0x447   :  { %2142 = vmatmul.mubr.msk.bf16.vlgmr.msra.gmra.mrb[24].mxu1 %vm1627_vm4, %v1623_v1 }
 0x448   :  { %2161 = vmatprep.mubr.msk.bf16.mxu1 %vm2501_vm0, %v2500_v47  ;;  %2146 = vmatpush3.bf16.msra.mxu1 %v2436_v58 }
 0x449   :  { %2147 = vmatprep.subr.bf16.mxu1 %v2500_v47 }
 0x44a   :  { %v1669_v3 = vpop.f32.mrb[20].mxu1 }
 0x44b   :  { %v2137_v4 = vpop.f32.mrb[21].mxu1 }
 0x44c   :  { %v1672_v6 = vpop.f32.mrb[22].mxu1  ;;  %2148 = vmatpush3.bf16.msra.mxu1 %v2437_v5 }
 0x44d   :  { %v2138_v7 = vpop.f32.mrb[23].mxu1  ;;  %2149 = vmatprep.subr.bf16.mxu1 %v2500_v47 }
 0x450   :  { %2150 = vmatpush3.bf16.msra.mxu1 %v2438_v8 }
 0x451   :  { %2151 = vmatprep.subr.bf16.mxu1 %v2500_v47 }
 0x454   :  { %2152 = vmatpush3.bf16.msra.mxu1 %v2439_v9 }
 0x455   :  { %2153 = vmatprep.subr.bf16.mxu1 %v2500_v47 }
 0x458   :  { %2154 = vmatpush3.bf16.msra.mxu1 %v2440_v10 }
 0x459   :  { %2155 = vmatprep.subr.bf16.mxu1 %v2500_v47 }
 0x45c   :  { %2156 = vmatpush3.bf16.msra.mxu1 %v2441_v11 }
 0x45d   :  { %2157 = vmatprep.subr.bf16.mxu1 %v2500_v47 }
 0x460   :  { %2158 = vmatpush3.bf16.msra.mxu1 %v2442_v12 }
 0x461   :  { %2159 = vmatprep.subr.bf16.mxu1 %v2500_v47 }
 0x464   :  { %2160 = vmatpush3.bf16.msra.mxu1 %v2443_v13 }
 0x4d3   :  { %v1613_v14 = vpop.xlane.xlu0 %1612 }
 0x4d4   :  { %v1614_v15 = vsub.f32 %v1601_v62, %v1613_v14 }
 0x4d6   :  { %v1615_v16 = vmul.f32 1.442695, %v1614_v15 }
 0x4d8   :  { %2444 = vpow2.f32 %v1615_v16 }
 0x4e2   :  { %v2445_v17 = vpop.eup %2444 }
 0x4e3   :  { %v1617_v18 = vsel %vm2775_vm7, %v2445_v17, 0.0 }
 0x4e4   :  { %1618 = vadd.xlane.f32.xlu0 %v1617_v18 }
 0x51a   :  { %v1715_v19 = vpop.f32.mrb[24].mxu1 }
 0x51b   :  { %v1716_v47 = vadd.f32 %v1715_v19, %v1669_v3  ;;  %v2143_v21 = vpop.f32.mrb[25].mxu1 }
 0x51c   :  { %v1718_v22 = vpop.f32.mrb[26].mxu1 }
 0x51d   :  { %v1728_v23 = vadd.f32 %v2046_v20, %v1716_v47  ;;  %v2144_v24 = vpop.f32.mrb[27].mxu1 }
 0x51f   :  { %v1729_v25 = vmax.f32 %v1728_v23, 0.0 }
 0x521   :  { %v1730_v26 = vpack.c.bf16 %v1729_v25, %v1729_v25 }
 0x523   :  { %2162 = vmatmul.mubr.bf16.vlgmr.msra.gmra.mrb[28].mxu1 %v1730_v26 }
 0x571   :  { %v1619_v27 = vpop.xlane.xlu0 %1618 }
 0x572   :  { %2446 = vrcp.f32 %v1619_v27 }
 0x57c   :  { %v2447_v28 = vpop.eup %2446 }
 0x57d   :  { %v1621_v29 = vmul.f32 %v2447_v28, %v1617_v18 }
 0x57f   :  { %v1622_v30 = vsel %vm2775_vm7, %v1621_v29, %v1601_v62 }
 0x580   :  { %1843 = vst [vmem:[#allocation5 + $0x8] sm:$0xff] %v1622_v30 }
 0x5f6   :  { %v1836_v32 = vpop.f32.mrb[28].mxu1 }
 0x5f7   :  { %v1837_v33 = vadd.f32 %v2047_v31, %v1836_v32  ;;  %v2163_v34 = vpop.f32.mrb[29].mxu1 }
 0x5f8   :  { %v1839_v35 = vpop.f32.mrb[30].mxu1 }
 0x5f9   :  { %1842 = vst [vmem:[#allocation5] sm:$0xff] %v1837_v33  ;;  %v2164_v36 = vpop.f32.mrb[31].mxu1 }
 0x5fa   :  { %2481 = shalt.err (!%p2478_p12)
}
 0x5fb   :  { %s2482_s17 = scalar_lea.hbm %s2855_s18, 256 }
 0x5fc   :  { %p2483_p13 = scmp.ne.s32.totalorder %s2855_s18, %s2482_s17  ;;  %p2486_p0 = scmp.lt.u32.totalorder %s2482_s17, %s2855_s18 }
 0x5fe   :  { %p2488_p1 = pnand %p2486_p0, %p2483_p13 }
 0x600   :  { %2491 = shalt.err (!%p2488_p1)
}
 0x601   :  { %1853 = dma.vmem_to_hbm [thread:$0]  %s1851_s29, 256, %s2855_s18, [#allocation4]  }
 0x602   :  { %2494 = dma.done.wait [#allocation4], 256  }
 0x603   :  { %2495 = vsyncadd [#allocation4], 4294967040 }
 0x604   :  { %1857 = vsyncpa [#allocation3], 1 }
 0x605   :  { %1858 = vsyncpa [#allocation4], 1 }

</bundles_post_ra>
